<compile_context>
chip_gen: v6e
topology: v6e:2x2x1
jax: 0.10.0
libtpu: 0.0.40
codegen_flags: <defaults>
</compile_context>

<pallas_src>
import math
from functools import partial

import jax
import jax.numpy as jnp
from jax.experimental import pallas as pl
from jax.experimental.pallas import tpu as pltpu


# ----------------------------------------------------------------------------- #
# Model hyper-parameters (match the torch module defaults)
# ----------------------------------------------------------------------------- #
D_MODEL = 64
N_LAYER = 3
VOCAB = 256
D_STATE = 64
D_CONV = 4
EXPAND = 2
D_INNER = EXPAND * D_MODEL            # 128
DT_RANK = math.ceil(D_MODEL / 16)     # 4
EPS = 1e-5

_VMEM_LIMIT = 32 * 1024 * 1024        # explicit budget, safe on v5e/v6e/v7x


# ----------------------------------------------------------------------------- #
# Small row-tiled kernels (embedding linear, final RMSNorm)
# ----------------------------------------------------------------------------- #
def _linear_kernel(x_ref, w_ref, b_ref, o_ref):
    o_ref[...] = (jnp.dot(x_ref[...], w_ref[...],
                          preferred_element_type=jnp.float32) + b_ref[...])


def linear_pallas(x2d, w_kn, bias, block_m=256):
    """x2d: (M, K); w_kn: (K, N); bias: (N,).  Tiled over rows of M."""
    M, K = x2d.shape
    N = w_kn.shape[1]
    tm = M if M <= block_m else block_m
    Mp = pl.cdiv(M, tm) * tm
    xp = x2d if Mp == M else jnp.pad(x2d, ((0, Mp - M), (0, 0)))
    out = pl.pallas_call(
        _linear_kernel,
        grid=(Mp // tm,),
        in_specs=[
            pl.BlockSpec((tm, K), lambda i: (i, 0)),
            pl.BlockSpec((K, N), lambda i: (0, 0)),
            pl.BlockSpec((1, N), lambda i: (0, 0)),
        ],
        out_specs=pl.BlockSpec((tm, N), lambda i: (i, 0)),
        out_shape=jax.ShapeDtypeStruct((Mp, N), jnp.float32),
        compiler_params=pltpu.CompilerParams(
            dimension_semantics=("parallel",),
            vmem_limit_bytes=_VMEM_LIMIT),
    )(xp, w_kn, bias.reshape(1, N))
    return out if Mp == M else out[:M]


def _rmsnorm_kernel(x_ref, w_ref, o_ref, *, eps):
    x = x_ref[...]
    ms = jnp.mean(x * x, axis=-1, keepdims=True)
    o_ref[...] = x * jax.lax.rsqrt(ms + eps) * w_ref[...]


def rmsnorm_pallas(x2d, weight, eps=EPS, block_m=512):
    M, D = x2d.shape
    tm = M if M <= block_m else block_m
    Mp = pl.cdiv(M, tm) * tm
    xp = x2d if Mp == M else jnp.pad(x2d, ((0, Mp - M), (0, 0)))
    out = pl.pallas_call(
        partial(_rmsnorm_kernel, eps=eps),
        grid=(Mp // tm,),
        in_specs=[
            pl.BlockSpec((tm, D), lambda i: (i, 0)),
            pl.BlockSpec((1, D), lambda i: (0, 0)),
        ],
        out_specs=pl.BlockSpec((tm, D), lambda i: (i, 0)),
        out_shape=jax.ShapeDtypeStruct((Mp, D), jnp.float32),
        compiler_params=pltpu.CompilerParams(
            dimension_semantics=("parallel",),
            vmem_limit_bytes=_VMEM_LIMIT),
    )(xp, weight.reshape(1, D))
    return out if Mp == M else out[:M]


# ----------------------------------------------------------------------------- #
# Fused Mamba residual block: norm -> in_proj -> conv+SiLU -> x_proj(+dt) ->
# selective scan -> gate -> out_proj -> +residual, all in one kernel.
# ----------------------------------------------------------------------------- #
def _mamba_layer_kernel(x_ref, norm_w_ref, in_w_ref, conv_w_ref, conv_b_ref,
                        xdbl_w_ref, xdbl_b_ref, A_t_ref, D_ref, out_w_ref,
                        o_ref, *, seq_len, d_inner, d_conv, d_state, eps):
    x = x_ref[0]                                           # (l, d_model)

    # ---- pre-norm (RMSNorm) -------------------------------------------------
    ms = jnp.mean(x * x, axis=-1, keepdims=True)
    h = x * jax.lax.rsqrt(ms + eps) * norm_w_ref[...]

    # ---- in_proj: h -> [xi | res] -------------------------------------------
    xr = jnp.dot(h, in_w_ref[...], preferred_element_type=jnp.float32)  # (l, 2*d_inner)
    xi = xr[:, :d_inner]                                   # (l, d_inner)
    res = xr[:, d_inner:]                                  # (l, d_inner)

    # ---- depthwise causal conv + SiLU (causal padding done in VMEM, no HBM) --
    cw = conv_w_ref[...]                                   # (d_conv, d_inner) tap-major
    zpad = jnp.zeros((d_conv - 1, d_inner), jnp.float32)
    xp = jnp.concatenate([zpad, xi], axis=0)               # (l + d_conv - 1, d_inner)
    acc = jnp.zeros((seq_len, d_inner), jnp.float32) + conv_b_ref[...]
    for k in range(d_conv):                                # static unrolled taps
        acc = acc + xp[k:k + seq_len, :] * cw[k:k + 1, :]
    xc = acc * jax.nn.sigmoid(acc)                         # SiLU

    # ---- x_proj with dt_proj folded in --------------------------------------
    x_dbl = (jnp.dot(xc, xdbl_w_ref[...], preferred_element_type=jnp.float32)
             + xdbl_b_ref[...])                            # (l, d_inner + 2n)
    delta = jax.nn.softplus(x_dbl[:, :d_inner])            # (l, d_inner)
    Bm = x_dbl[:, d_inner:d_inner + d_state]               # (l, n)
    Cm = x_dbl[:, d_inner + d_state:]                      # (l, n)

    # ---- selective scan, lane-dense state (n sublanes x d_inner lanes) -------
    A_t = A_t_ref[...]                                     # (n, d_inner)
    du = delta * xc                                        # (l, d_inner)
    # Vectorised pre-pass: all EUP (exp) and dBu work batched over time, off the
    # serial recurrence critical path.
    dA_all = jnp.exp(delta[:, None, :] * A_t[None, :, :])  # (l, n, d_inner)
    dBu_all = du[:, None, :] * Bm[:, :, None]              # (l, n, d_inner)

    state = jnp.zeros((d_state, d_inner), jnp.float32)     # carried in vregs
    ys = []
    for i in range(seq_len):                               # unrolled; pure VPU chain
        state = dA_all[i] * state + dBu_all[i]
        # y_t[d] = sum_n C[t, n] * state[n, d]  -> tiny MXU matvec (1, n) @ (n, d)
        ys.append(jnp.dot(Cm[i:i + 1, :], state,
                          preferred_element_type=jnp.float32))
    y = jnp.concatenate(ys, axis=0)                        # (l, d_inner)
    y = y + xc * D_ref[...]

    # ---- gate + out_proj + residual ------------------------------------------
    g = y * (res * jax.nn.sigmoid(res))                    # y * silu(res)
    out = jnp.dot(g, out_w_ref[...], preferred_element_type=jnp.float32)  # (l, d_model)
    o_ref[0] = x + out


def mamba_layer_pallas(x_bld, flp):
    b, l, d = x_bld.shape
    n_xdbl = D_INNER + 2 * D_STATE
    kernel = partial(_mamba_layer_kernel, seq_len=l, d_inner=D_INNER,
                     d_conv=D_CONV, d_state=D_STATE, eps=EPS)
    return pl.pallas_call(
        kernel,
        grid=(b,),
        in_specs=[
            pl.BlockSpec((1, l, d), lambda i: (i, 0, 0)),          # x (per batch)
            pl.BlockSpec((1, d), lambda i: (0, 0)),                # norm_w
            pl.BlockSpec((d, 2 * D_INNER), lambda i: (0, 0)),      # in_proj_w
            pl.BlockSpec((D_CONV, D_INNER), lambda i: (0, 0)),     # conv_w
            pl.BlockSpec((1, D_INNER), lambda i: (0, 0)),          # conv_b
            pl.BlockSpec((D_INNER, n_xdbl), lambda i: (0, 0)),     # xdbl_w (dt folded)
            pl.BlockSpec((1, n_xdbl), lambda i: (0, 0)),           # xdbl_b
            pl.BlockSpec((D_STATE, D_INNER), lambda i: (0, 0)),    # A^T (lane dense)
            pl.BlockSpec((1, D_INNER), lambda i: (0, 0)),          # D
            pl.BlockSpec((D_INNER, d), lambda i: (0, 0)),          # out_proj_w
        ],
        out_specs=pl.BlockSpec((1, l, d), lambda i: (i, 0, 0)),
        out_shape=jax.ShapeDtypeStruct((b, l, d), jnp.float32),
        compiler_params=pltpu.CompilerParams(
            dimension_semantics=("parallel",),
            vmem_limit_bytes=_VMEM_LIMIT),
    )(x_bld, flp["norm_w"], flp["in_proj_w"], flp["conv_w"], flp["conv_b"],
      flp["xdbl_w"], flp["xdbl_b"], flp["A_t"], flp["D"], flp["out_proj_w"])


# ----------------------------------------------------------------------------- #
# Parameters
# ----------------------------------------------------------------------------- #
def init_params(key):
    keys = jax.random.split(key, 4 + N_LAYER * 8)
    ki = iter(keys)

    def uni(k, shape, fan_in):
        bound = 1.0 / math.sqrt(fan_in)
        return jax.random.uniform(k, shape, jnp.float32, -bound, bound)

    params = {
        "emb_w": uni(next(ki), (VOCAB, D_MODEL), VOCAB),
        "emb_b": uni(next(ki), (D_MODEL,), VOCAB),
        "norm_f_w": jnp.ones((D_MODEL,), jnp.float32),
        "layers": [],
    }
    for _ in range(N_LAYER):
        lp = {
            "norm_w": jnp.ones((D_MODEL,), jnp.float32),
            "in_proj_w": uni(next(ki), (D_MODEL, 2 * D_INNER), D_MODEL),   # (K, N)
            "conv_w": uni(next(ki), (D_CONV, D_INNER), D_CONV),            # tap-major
            "conv_b": uni(next(ki), (D_INNER,), D_CONV),
            "x_proj_w": uni(next(ki), (D_INNER, DT_RANK + 2 * D_STATE), D_INNER),
            "dt_proj_w": uni(next(ki), (DT_RANK, D_INNER), DT_RANK),
            "dt_proj_b": uni(next(ki), (D_INNER,), DT_RANK),
            "A_log": jnp.broadcast_to(
                jnp.log(jnp.arange(1, D_STATE + 1, dtype=jnp.float32))[None, :],
                (D_INNER, D_STATE)),
            "D": jnp.ones((D_INNER,), jnp.float32),
            "out_proj_w": uni(next(ki), (D_INNER, D_MODEL), D_INNER),
        }
        params["layers"].append(lp)
    return params


def fuse_params(params):
    """One-time parameter prep: fold dt_proj into x_proj, precompute A^T, 2-D biases."""
    fused = {"emb_w": params["emb_w"], "emb_b": params["emb_b"],
             "norm_f_w": params["norm_f_w"], "layers": []}
    for lp in params["layers"]:
        w_dt = lp["x_proj_w"][:, :DT_RANK] @ lp["dt_proj_w"]          # (d_inner, d_inner)
        xdbl_w = jnp.concatenate([w_dt, lp["x_proj_w"][:, DT_RANK:]], axis=1)
        xdbl_b = jnp.concatenate(
            [lp["dt_proj_b"], jnp.zeros((2 * D_STATE,), jnp.float32)])
        fused["layers"].append({
            "norm_w": lp["norm_w"].reshape(1, D_MODEL),
            "in_proj_w": lp["in_proj_w"],
            "conv_w": lp["conv_w"],
            "conv_b": lp["conv_b"].reshape(1, D_INNER),
            "xdbl_w": xdbl_w,
            "xdbl_b": xdbl_b.reshape(1, D_INNER + 2 * D_STATE),
            "A_t": (-jnp.exp(lp["A_log"])).T,                          # (n, d_inner)
            "D": lp["D"].reshape(1, D_INNER),
            "out_proj_w": lp["out_proj_w"],
        })
    return fused


# ----------------------------------------------------------------------------- #
# Forward
# ----------------------------------------------------------------------------- #
def mamba_forward(input_ids, fparams):
    # NOTE: the torch module uses nn.Linear as "embedding", so the input is a
    # float tensor of shape (b, l, vocab_size).
    b, l, v = input_ids.shape
    x = linear_pallas(input_ids.reshape(b * l, v), fparams["emb_w"], fparams["emb_b"])
    x = x.reshape(b, l, D_MODEL)
    for flp in fparams["layers"]:
        x = mamba_layer_pallas(x, flp)        # fused norm+mixer+residual
    x2d = rmsnorm_pallas(x.reshape(b * l, D_MODEL), fparams["norm_f_w"])
    return x2d.reshape(b, l, D_MODEL)


# ----------------------------------------------------------------------------- #
# Pure-JAX reference (for validation) — uses raw (unfused) params
# ----------------------------------------------------------------------------- #
def ref_forward(input_ids, params):
    hi = jax.lax.Precision.HIGHEST

    def lin(x, w, bias=None):
        y = jnp.einsum("...k,kn->...n", x, w, precision=hi)
        return y if bias is None else y + bias

    def rmsn(x, w, eps=EPS):
        return x * jax.lax.rsqrt(jnp.mean(x * x, -1, keepdims=True) + eps) * w

    def silu(x):
        return x * jax.nn.sigmoid(x)

    x = lin(input_ids, params["emb_w"], params["emb_b"])
    for lp in params["layers"]:
        h = rmsn(x, lp["norm_w"])
        xr = lin(h, lp["in_proj_w"])
        xi, res = xr[..., :D_INNER], xr[..., D_INNER:]
        b, l, _ = xi.shape
        xp = jnp.pad(xi, ((0, 0), (D_CONV - 1, 0), (0, 0)))
        xc = sum(xp[:, k:k + l, :] * lp["conv_w"][k] for k in range(D_CONV)) + lp["conv_b"]
        xc = silu(xc)
        x_dbl = lin(xc, lp["x_proj_w"])
        delta_r = x_dbl[..., :DT_RANK]
        Bm = x_dbl[..., DT_RANK:DT_RANK + D_STATE]
        Cm = x_dbl[..., DT_RANK + D_STATE:]
        delta = jax.nn.softplus(lin(delta_r, lp["dt_proj_w"], lp["dt_proj_b"]))
        A = -jnp.exp(lp["A_log"])

        def step(state, inp):
            u_i, dt_i, B_i, C_i = inp
            dA = jnp.exp(dt_i[:, :, None] * A[None])
            dBu = (dt_i * u_i)[:, :, None] * B_i[:, None, :]
            state = dA * state + dBu
            y_i = jnp.sum(state * C_i[:, None, :], -1)
            return state, y_i

        init = jnp.zeros((b, D_INNER, D_STATE), jnp.float32)
        _, ys = jax.lax.scan(step, init,
                             (xc.transpose(1, 0, 2), delta.transpose(1, 0, 2),
                              Bm.transpose(1, 0, 2), Cm.transpose(1, 0, 2)))
        y = ys.transpose(1, 0, 2) + xc * lp["D"]
        y = y * silu(res)
        x = x + lin(y, lp["out_proj_w"])
    return rmsn(x, params["norm_f_w"])


# ----------------------------------------------------------------------------- #
if __name__ == "__main__":
    key = jax.random.PRNGKey(0)
    params = init_params(key)
    fparams = fuse_params(params)

    b, l = 2, 8
    x_in = jax.random.normal(jax.random.PRNGKey(1), (b, l, VOCAB), jnp.float32)

    out = jax.block_until_ready(jax.jit(mamba_forward)(x_in, fparams))
    ref = jax.block_until_ready(ref_forward(x_in, params))

    assert out.shape == (b, l, D_MODEL)
    assert bool(jnp.all(jnp.isfinite(out)))
    max_err = float(jnp.max(jnp.abs(out - ref)))
    assert bool(jnp.allclose(out, ref, rtol=2e-2, atol=2e-2)), max_err

    print("KERNEL_OK")
</pallas_src>

<mosaic_0001>
module attributes {stable_mosaic.version = 11 : i64} {
  func.func @_mamba_layer_kernel(%arg0: i32, %arg1: memref<1x8x64xf32, #tpu.memory_space<vmem>>, %arg2: memref<1x64xf32, #tpu.memory_space<vmem>>, %arg3: memref<64x256xf32, #tpu.memory_space<vmem>>, %arg4: memref<4x128xf32, #tpu.memory_space<vmem>>, %arg5: memref<1x128xf32, #tpu.memory_space<vmem>>, %arg6: memref<128x256xf32, #tpu.memory_space<vmem>>, %arg7: memref<1x256xf32, #tpu.memory_space<vmem>>, %arg8: memref<64x128xf32, #tpu.memory_space<vmem>>, %arg9: memref<1x128xf32, #tpu.memory_space<vmem>>, %arg10: memref<128x64xf32, #tpu.memory_space<vmem>>, %arg11: memref<1x8x64xf32, #tpu.memory_space<vmem>>) attributes {dimension_semantics = [#tpu.dimension_semantics<parallel>], iteration_bounds = array<i64: 2>, scalar_prefetch = 0 : i64, scratch_operands = 0 : i64, tpu.core_type = #tpu.core_type<tc>, window_params = [{transform_indices = @transform_0, window_bounds = array<i64: 1, 8, 64>}, {pipeline_mode = #tpu.pipeline_mode<synchronous>, transform_indices = @transform_1, window_bounds = array<i64: 1, 64>}, {pipeline_mode = #tpu.pipeline_mode<synchronous>, transform_indices = @transform_2, window_bounds = array<i64: 64, 256>}, {pipeline_mode = #tpu.pipeline_mode<synchronous>, transform_indices = @transform_3, window_bounds = array<i64: 4, 128>}, {pipeline_mode = #tpu.pipeline_mode<synchronous>, transform_indices = @transform_4, window_bounds = array<i64: 1, 128>}, {pipeline_mode = #tpu.pipeline_mode<synchronous>, transform_indices = @transform_5, window_bounds = array<i64: 128, 256>}, {pipeline_mode = #tpu.pipeline_mode<synchronous>, transform_indices = @transform_6, window_bounds = array<i64: 1, 256>}, {pipeline_mode = #tpu.pipeline_mode<synchronous>, transform_indices = @transform_7, window_bounds = array<i64: 64, 128>}, {pipeline_mode = #tpu.pipeline_mode<synchronous>, transform_indices = @transform_8, window_bounds = array<i64: 1, 128>}, {pipeline_mode = #tpu.pipeline_mode<synchronous>, transform_indices = @transform_9, window_bounds = array<i64: 128, 64>}, {transform_indices = @transform_10, window_bounds = array<i64: 1, 8, 64>}]} {
    %c0 = arith.constant 0 : index
    %c0_0 = arith.constant 0 : index
    %c0_1 = arith.constant 0 : index
    %0 = vector.load %arg1[%c0, %c0_0, %c0_1] : memref<1x8x64xf32, #tpu.memory_space<vmem>>, vector<1x8x64xf32>
    %1 = vector.shape_cast %0 : vector<1x8x64xf32> to vector<8x64xf32>
    %2 = arith.mulf %1, %1 : vector<8x64xf32>
    %cst = arith.constant dense<0.000000e+00> : vector<8xf32>
    %3 = vector.multi_reduction <add>, %2, %cst [1] : vector<8x64xf32> to vector<8xf32>
    %4 = vector.shape_cast %3 : vector<8xf32> to vector<8x1xf32>
    %cst_2 = arith.constant 6.400000e+01 : f32
    %5 = vector.broadcast %cst_2 : f32 to vector<8x1xf32>
    %6 = arith.divf %4, %5 : vector<8x1xf32>
    %cst_3 = arith.constant 9.99999974E-6 : f32
    %7 = vector.broadcast %cst_3 : f32 to vector<8x1xf32>
    %8 = arith.addf %6, %7 : vector<8x1xf32>
    %9 = math.rsqrt %8 : vector<8x1xf32>
    %10 = vector.broadcast %9 : vector<8x1xf32> to vector<8x64xf32>
    %11 = arith.mulf %1, %10 : vector<8x64xf32>
    %c0_4 = arith.constant 0 : index
    %c0_5 = arith.constant 0 : index
    %12 = vector.load %arg2[%c0_4, %c0_5] : memref<1x64xf32, #tpu.memory_space<vmem>>, vector<1x64xf32>
    %13 = vector.broadcast %12 : vector<1x64xf32> to vector<8x64xf32>
    %14 = arith.mulf %11, %13 : vector<8x64xf32>
    %c0_6 = arith.constant 0 : index
    %c0_7 = arith.constant 0 : index
    %15 = vector.load %arg3[%c0_6, %c0_7] : memref<64x256xf32, #tpu.memory_space<vmem>>, vector<64x256xf32>
    %cst_8 = arith.constant dense<0.000000e+00> : vector<8x256xf32>
    %16 = tpu.matmul %14, %15, %cst_8 {dimension_numbers = #tpu.dot_dimension_numbers<[1], [0], [0], [1], [0, 0, 1, 1], [], []>} : vector<8x64xf32>, vector<64x256xf32>, vector<8x256xf32> -> vector<8x256xf32>
    %17 = vector.extract_strided_slice %16 {offsets = [0, 0], sizes = [8, 128], strides = [1, 1]} : vector<8x256xf32> to vector<8x128xf32>
    %18 = vector.extract_strided_slice %16 {offsets = [0, 128], sizes = [8, 128], strides = [1, 1]} : vector<8x256xf32> to vector<8x128xf32>
    %c0_9 = arith.constant 0 : index
    %c0_10 = arith.constant 0 : index
    %19 = vector.load %arg4[%c0_9, %c0_10] : memref<4x128xf32, #tpu.memory_space<vmem>>, vector<4x128xf32>
    %cst_11 = arith.constant 0.000000e+00 : f32
    %20 = vector.broadcast %cst_11 : f32 to vector<3x128xf32>
    %21 = tpu.concatenate %20, %17 in 0 : vector<3x128xf32>, vector<8x128xf32> -> vector<11x128xf32>
    %cst_12 = arith.constant 0.000000e+00 : f32
    %22 = vector.broadcast %cst_12 : f32 to vector<8x128xf32>
    %c0_13 = arith.constant 0 : index
    %c0_14 = arith.constant 0 : index
    %23 = vector.load %arg5[%c0_13, %c0_14] : memref<1x128xf32, #tpu.memory_space<vmem>>, vector<1x128xf32>
    %24 = vector.broadcast %23 : vector<1x128xf32> to vector<8x128xf32>
    %25 = arith.addf %22, %24 : vector<8x128xf32>
    %26 = vector.extract_strided_slice %21 {offsets = [0, 0], sizes = [8, 128], strides = [1, 1]} : vector<11x128xf32> to vector<8x128xf32>
    %27 = vector.extract_strided_slice %19 {offsets = [0, 0], sizes = [1, 128], strides = [1, 1]} : vector<4x128xf32> to vector<1x128xf32>
    %28 = vector.broadcast %27 : vector<1x128xf32> to vector<8x128xf32>
    %29 = arith.mulf %26, %28 : vector<8x128xf32>
    %30 = arith.addf %25, %29 : vector<8x128xf32>
    %31 = vector.extract_strided_slice %21 {offsets = [1, 0], sizes = [8, 128], strides = [1, 1]} : vector<11x128xf32> to vector<8x128xf32>
    %32 = vector.extract_strided_slice %19 {offsets = [1, 0], sizes = [1, 128], strides = [1, 1]} : vector<4x128xf32> to vector<1x128xf32>
    %33 = vector.broadcast %32 : vector<1x128xf32> to vector<8x128xf32>
    %34 = arith.mulf %31, %33 : vector<8x128xf32>
    %35 = arith.addf %30, %34 : vector<8x128xf32>
    %36 = vector.extract_strided_slice %21 {offsets = [2, 0], sizes = [8, 128], strides = [1, 1]} : vector<11x128xf32> to vector<8x128xf32>
    %37 = vector.extract_strided_slice %19 {offsets = [2, 0], sizes = [1, 128], strides = [1, 1]} : vector<4x128xf32> to vector<1x128xf32>
    %38 = vector.broadcast %37 : vector<1x128xf32> to vector<8x128xf32>
    %39 = arith.mulf %36, %38 : vector<8x128xf32>
    %40 = arith.addf %35, %39 : vector<8x128xf32>
    %41 = vector.extract_strided_slice %21 {offsets = [3, 0], sizes = [8, 128], strides = [1, 1]} : vector<11x128xf32> to vector<8x128xf32>
    %42 = vector.extract_strided_slice %19 {offsets = [3, 0], sizes = [1, 128], strides = [1, 1]} : vector<4x128xf32> to vector<1x128xf32>
    %43 = vector.broadcast %42 : vector<1x128xf32> to vector<8x128xf32>
    %44 = arith.mulf %41, %43 : vector<8x128xf32>
    %45 = arith.addf %40, %44 : vector<8x128xf32>
    %46 = arith.negf %45 : vector<8x128xf32>
    %47 = math.exp %46 : vector<8x128xf32>
    %cst_15 = arith.constant 1.000000e+00 : f32
    %48 = vector.broadcast %cst_15 : f32 to vector<8x128xf32>
    %49 = arith.addf %48, %47 : vector<8x128xf32>
    %50 = arith.divf %48, %49 : vector<8x128xf32>
    %51 = arith.mulf %45, %50 : vector<8x128xf32>
    %c0_16 = arith.constant 0 : index
    %c0_17 = arith.constant 0 : index
    %52 = vector.load %arg6[%c0_16, %c0_17] : memref<128x256xf32, #tpu.memory_space<vmem>>, vector<128x256xf32>
    %cst_18 = arith.constant dense<0.000000e+00> : vector<8x256xf32>
    %53 = tpu.matmul %51, %52, %cst_18 {dimension_numbers = #tpu.dot_dimension_numbers<[1], [0], [0], [1], [0, 0, 1, 1], [], []>} : vector<8x128xf32>, vector<128x256xf32>, vector<8x256xf32> -> vector<8x256xf32>
    %c0_19 = arith.constant 0 : index
    %c0_20 = arith.constant 0 : index
    %54 = vector.load %arg7[%c0_19, %c0_20] : memref<1x256xf32, #tpu.memory_space<vmem>>, vector<1x256xf32>
    %55 = vector.broadcast %54 : vector<1x256xf32> to vector<8x256xf32>
    %56 = arith.addf %53, %55 : vector<8x256xf32>
    %57 = vector.extract_strided_slice %56 {offsets = [0, 0], sizes = [8, 128], strides = [1, 1]} : vector<8x256xf32> to vector<8x128xf32>
    %cst_21 = arith.constant 0.000000e+00 : f32
    %58 = vector.broadcast %cst_21 : f32 to vector<8x128xf32>
    %59 = arith.maximumf %57, %58 : vector<8x128xf32>
    %60 = vector.broadcast %cst_21 : f32 to vector<8x128xf32>
    %61 = arith.subf %57, %60 : vector<8x128xf32>
    %62 = arith.cmpf one, %61, %61 : vector<8x128xf32>
    %63 = vector.broadcast %cst_21 : f32 to vector<8x128xf32>
    %64 = arith.addf %57, %63 : vector<8x128xf32>
    %65 = math.absf %61 : vector<8x128xf32>
    %cst_22 = arith.constant 0.000000e+00 : f32
    %66 = vector.broadcast %cst_22 : f32 to vector<8x128xf32>
    %67 = arith.subf %66, %65 : vector<8x128xf32>
    %68 = math.exp %67 : vector<8x128xf32>
    %69 = math.log1p %68 : vector<8x128xf32>
    %70 = arith.addf %59, %69 : vector<8x128xf32>
    %71 = arith.select %62, %64, %70 : vector<8x128xi1>, vector<8x128xf32>
    %72 = vector.extract_strided_slice %56 {offsets = [0, 128], sizes = [8, 64], strides = [1, 1]} : vector<8x256xf32> to vector<8x64xf32>
    %73 = vector.extract_strided_slice %56 {offsets = [0, 192], sizes = [8, 64], strides = [1, 1]} : vector<8x256xf32> to vector<8x64xf32>
    %c0_23 = arith.constant 0 : index
    %c0_24 = arith.constant 0 : index
    %74 = vector.load %arg8[%c0_23, %c0_24] : memref<64x128xf32, #tpu.memory_space<vmem>>, vector<64x128xf32>
    %75 = arith.mulf %71, %51 : vector<8x128xf32>
    %76 = vector.shape_cast %71 : vector<8x128xf32> to vector<8x1x128xf32>
    %77 = vector.shape_cast %74 : vector<64x128xf32> to vector<1x64x128xf32>
    %78 = vector.broadcast %76 : vector<8x1x128xf32> to vector<8x64x128xf32>
    %79 = vector.broadcast %77 : vector<1x64x128xf32> to vector<8x64x128xf32>
    %80 = arith.mulf %78, %79 : vector<8x64x128xf32>
    %81 = math.exp %80 : vector<8x64x128xf32>
    %82 = vector.shape_cast %75 : vector<8x128xf32> to vector<8x1x128xf32>
    %83 = vector.shape_cast %72 : vector<8x64xf32> to vector<8x64x1xf32>
    %84 = vector.broadcast %82 : vector<8x1x128xf32> to vector<8x64x128xf32>
    %85 = vector.broadcast %83 : vector<8x64x1xf32> to vector<8x64x128xf32>
    %86 = arith.mulf %84, %85 : vector<8x64x128xf32>
    %cst_25 = arith.constant 0.000000e+00 : f32
    %87 = vector.broadcast %cst_25 : f32 to vector<64x128xf32>
    %88 = vector.extract_strided_slice %81 {offsets = [0, 0, 0], sizes = [1, 64, 128], strides = [1, 1, 1]} : vector<8x64x128xf32> to vector<1x64x128xf32>
    %89 = vector.shape_cast %88 : vector<1x64x128xf32> to vector<64x128xf32>
    %90 = arith.mulf %89, %87 : vector<64x128xf32>
    %91 = vector.extract_strided_slice %86 {offsets = [0, 0, 0], sizes = [1, 64, 128], strides = [1, 1, 1]} : vector<8x64x128xf32> to vector<1x64x128xf32>
    %92 = vector.shape_cast %91 : vector<1x64x128xf32> to vector<64x128xf32>
    %93 = arith.addf %90, %92 : vector<64x128xf32>
    %94 = vector.extract_strided_slice %73 {offsets = [0, 0], sizes = [1, 64], strides = [1, 1]} : vector<8x64xf32> to vector<1x64xf32>
    %cst_26 = arith.constant dense<0.000000e+00> : vector<1x128xf32>
    %95 = tpu.matmul %94, %93, %cst_26 {dimension_numbers = #tpu.dot_dimension_numbers<[1], [0], [0], [1], [0, 0, 1, 1], [], []>} : vector<1x64xf32>, vector<64x128xf32>, vector<1x128xf32> -> vector<1x128xf32>
    %96 = vector.extract_strided_slice %81 {offsets = [1, 0, 0], sizes = [1, 64, 128], strides = [1, 1, 1]} : vector<8x64x128xf32> to vector<1x64x128xf32>
    %97 = vector.shape_cast %96 : vector<1x64x128xf32> to vector<64x128xf32>
    %98 = arith.mulf %97, %93 : vector<64x128xf32>
    %99 = vector.extract_strided_slice %86 {offsets = [1, 0, 0], sizes = [1, 64, 128], strides = [1, 1, 1]} : vector<8x64x128xf32> to vector<1x64x128xf32>
    %100 = vector.shape_cast %99 : vector<1x64x128xf32> to vector<64x128xf32>
    %101 = arith.addf %98, %100 : vector<64x128xf32>
    %102 = vector.extract_strided_slice %73 {offsets = [1, 0], sizes = [1, 64], strides = [1, 1]} : vector<8x64xf32> to vector<1x64xf32>
    %cst_27 = arith.constant dense<0.000000e+00> : vector<1x128xf32>
    %103 = tpu.matmul %102, %101, %cst_27 {dimension_numbers = #tpu.dot_dimension_numbers<[1], [0], [0], [1], [0, 0, 1, 1], [], []>} : vector<1x64xf32>, vector<64x128xf32>, vector<1x128xf32> -> vector<1x128xf32>
    %104 = vector.extract_strided_slice %81 {offsets = [2, 0, 0], sizes = [1, 64, 128], strides = [1, 1, 1]} : vector<8x64x128xf32> to vector<1x64x128xf32>
    %105 = vector.shape_cast %104 : vector<1x64x128xf32> to vector<64x128xf32>
    %106 = arith.mulf %105, %101 : vector<64x128xf32>
    %107 = vector.extract_strided_slice %86 {offsets = [2, 0, 0], sizes = [1, 64, 128], strides = [1, 1, 1]} : vector<8x64x128xf32> to vector<1x64x128xf32>
    %108 = vector.shape_cast %107 : vector<1x64x128xf32> to vector<64x128xf32>
    %109 = arith.addf %106, %108 : vector<64x128xf32>
    %110 = vector.extract_strided_slice %73 {offsets = [2, 0], sizes = [1, 64], strides = [1, 1]} : vector<8x64xf32> to vector<1x64xf32>
    %cst_28 = arith.constant dense<0.000000e+00> : vector<1x128xf32>
    %111 = tpu.matmul %110, %109, %cst_28 {dimension_numbers = #tpu.dot_dimension_numbers<[1], [0], [0], [1], [0, 0, 1, 1], [], []>} : vector<1x64xf32>, vector<64x128xf32>, vector<1x128xf32> -> vector<1x128xf32>
    %112 = vector.extract_strided_slice %81 {offsets = [3, 0, 0], sizes = [1, 64, 128], strides = [1, 1, 1]} : vector<8x64x128xf32> to vector<1x64x128xf32>
    %113 = vector.shape_cast %112 : vector<1x64x128xf32> to vector<64x128xf32>
    %114 = arith.mulf %113, %109 : vector<64x128xf32>
    %115 = vector.extract_strided_slice %86 {offsets = [3, 0, 0], sizes = [1, 64, 128], strides = [1, 1, 1]} : vector<8x64x128xf32> to vector<1x64x128xf32>
    %116 = vector.shape_cast %115 : vector<1x64x128xf32> to vector<64x128xf32>
    %117 = arith.addf %114, %116 : vector<64x128xf32>
    %118 = vector.extract_strided_slice %73 {offsets = [3, 0], sizes = [1, 64], strides = [1, 1]} : vector<8x64xf32> to vector<1x64xf32>
    %cst_29 = arith.constant dense<0.000000e+00> : vector<1x128xf32>
    %119 = tpu.matmul %118, %117, %cst_29 {dimension_numbers = #tpu.dot_dimension_numbers<[1], [0], [0], [1], [0, 0, 1, 1], [], []>} : vector<1x64xf32>, vector<64x128xf32>, vector<1x128xf32> -> vector<1x128xf32>
    %120 = vector.extract_strided_slice %81 {offsets = [4, 0, 0], sizes = [1, 64, 128], strides = [1, 1, 1]} : vector<8x64x128xf32> to vector<1x64x128xf32>
    %121 = vector.shape_cast %120 : vector<1x64x128xf32> to vector<64x128xf32>
    %122 = arith.mulf %121, %117 : vector<64x128xf32>
    %123 = vector.extract_strided_slice %86 {offsets = [4, 0, 0], sizes = [1, 64, 128], strides = [1, 1, 1]} : vector<8x64x128xf32> to vector<1x64x128xf32>
    %124 = vector.shape_cast %123 : vector<1x64x128xf32> to vector<64x128xf32>
    %125 = arith.addf %122, %124 : vector<64x128xf32>
    %126 = vector.extract_strided_slice %73 {offsets = [4, 0], sizes = [1, 64], strides = [1, 1]} : vector<8x64xf32> to vector<1x64xf32>
    %cst_30 = arith.constant dense<0.000000e+00> : vector<1x128xf32>
    %127 = tpu.matmul %126, %125, %cst_30 {dimension_numbers = #tpu.dot_dimension_numbers<[1], [0], [0], [1], [0, 0, 1, 1], [], []>} : vector<1x64xf32>, vector<64x128xf32>, vector<1x128xf32> -> vector<1x128xf32>
    %128 = vector.extract_strided_slice %81 {offsets = [5, 0, 0], sizes = [1, 64, 128], strides = [1, 1, 1]} : vector<8x64x128xf32> to vector<1x64x128xf32>
    %129 = vector.shape_cast %128 : vector<1x64x128xf32> to vector<64x128xf32>
    %130 = arith.mulf %129, %125 : vector<64x128xf32>
    %131 = vector.extract_strided_slice %86 {offsets = [5, 0, 0], sizes = [1, 64, 128], strides = [1, 1, 1]} : vector<8x64x128xf32> to vector<1x64x128xf32>
    %132 = vector.shape_cast %131 : vector<1x64x128xf32> to vector<64x128xf32>
    %133 = arith.addf %130, %132 : vector<64x128xf32>
    %134 = vector.extract_strided_slice %73 {offsets = [5, 0], sizes = [1, 64], strides = [1, 1]} : vector<8x64xf32> to vector<1x64xf32>
    %cst_31 = arith.constant dense<0.000000e+00> : vector<1x128xf32>
    %135 = tpu.matmul %134, %133, %cst_31 {dimension_numbers = #tpu.dot_dimension_numbers<[1], [0], [0], [1], [0, 0, 1, 1], [], []>} : vector<1x64xf32>, vector<64x128xf32>, vector<1x128xf32> -> vector<1x128xf32>
    %136 = vector.extract_strided_slice %81 {offsets = [6, 0, 0], sizes = [1, 64, 128], strides = [1, 1, 1]} : vector<8x64x128xf32> to vector<1x64x128xf32>
    %137 = vector.shape_cast %136 : vector<1x64x128xf32> to vector<64x128xf32>
    %138 = arith.mulf %137, %133 : vector<64x128xf32>
    %139 = vector.extract_strided_slice %86 {offsets = [6, 0, 0], sizes = [1, 64, 128], strides = [1, 1, 1]} : vector<8x64x128xf32> to vector<1x64x128xf32>
    %140 = vector.shape_cast %139 : vector<1x64x128xf32> to vector<64x128xf32>
    %141 = arith.addf %138, %140 : vector<64x128xf32>
    %142 = vector.extract_strided_slice %73 {offsets = [6, 0], sizes = [1, 64], strides = [1, 1]} : vector<8x64xf32> to vector<1x64xf32>
    %cst_32 = arith.constant dense<0.000000e+00> : vector<1x128xf32>
    %143 = tpu.matmul %142, %141, %cst_32 {dimension_numbers = #tpu.dot_dimension_numbers<[1], [0], [0], [1], [0, 0, 1, 1], [], []>} : vector<1x64xf32>, vector<64x128xf32>, vector<1x128xf32> -> vector<1x128xf32>
    %144 = vector.extract_strided_slice %81 {offsets = [7, 0, 0], sizes = [1, 64, 128], strides = [1, 1, 1]} : vector<8x64x128xf32> to vector<1x64x128xf32>
    %145 = vector.shape_cast %144 : vector<1x64x128xf32> to vector<64x128xf32>
    %146 = arith.mulf %145, %141 : vector<64x128xf32>
    %147 = vector.extract_strided_slice %86 {offsets = [7, 0, 0], sizes = [1, 64, 128], strides = [1, 1, 1]} : vector<8x64x128xf32> to vector<1x64x128xf32>
    %148 = vector.shape_cast %147 : vector<1x64x128xf32> to vector<64x128xf32>
    %149 = arith.addf %146, %148 : vector<64x128xf32>
    %150 = vector.extract_strided_slice %73 {offsets = [7, 0], sizes = [1, 64], strides = [1, 1]} : vector<8x64xf32> to vector<1x64xf32>
    %cst_33 = arith.constant dense<0.000000e+00> : vector<1x128xf32>
    %151 = tpu.matmul %150, %149, %cst_33 {dimension_numbers = #tpu.dot_dimension_numbers<[1], [0], [0], [1], [0, 0, 1, 1], [], []>} : vector<1x64xf32>, vector<64x128xf32>, vector<1x128xf32> -> vector<1x128xf32>
    %152 = tpu.concatenate %95, %103, %111, %119, %127, %135, %143, %151 in 0 : vector<1x128xf32>, vector<1x128xf32>, vector<1x128xf32>, vector<1x128xf32>, vector<1x128xf32>, vector<1x128xf32>, vector<1x128xf32>, vector<1x128xf32> -> vector<8x128xf32>
    %c0_34 = arith.constant 0 : index
    %c0_35 = arith.constant 0 : index
    %153 = vector.load %arg9[%c0_34, %c0_35] : memref<1x128xf32, #tpu.memory_space<vmem>>, vector<1x128xf32>
    %154 = vector.broadcast %153 : vector<1x128xf32> to vector<8x128xf32>
    %155 = arith.mulf %51, %154 : vector<8x128xf32>
    %156 = arith.addf %152, %155 : vector<8x128xf32>
    %157 = arith.negf %18 : vector<8x128xf32>
    %158 = math.exp %157 : vector<8x128xf32>
    %cst_36 = arith.constant 1.000000e+00 : f32
    %159 = vector.broadcast %cst_36 : f32 to vector<8x128xf32>
    %160 = arith.addf %159, %158 : vector<8x128xf32>
    %161 = arith.divf %159, %160 : vector<8x128xf32>
    %162 = arith.mulf %18, %161 : vector<8x128xf32>
    %163 = arith.mulf %156, %162 : vector<8x128xf32>
    %c0_37 = arith.constant 0 : index
    %c0_38 = arith.constant 0 : index
    %164 = vector.load %arg10[%c0_37, %c0_38] : memref<128x64xf32, #tpu.memory_space<vmem>>, vector<128x64xf32>
    %cst_39 = arith.constant dense<0.000000e+00> : vector<8x64xf32>
    %165 = tpu.matmul %163, %164, %cst_39 {dimension_numbers = #tpu.dot_dimension_numbers<[1], [0], [0], [1], [0, 0, 1, 1], [], []>} : vector<8x128xf32>, vector<128x64xf32>, vector<8x64xf32> -> vector<8x64xf32>
    %166 = arith.addf %1, %165 : vector<8x64xf32>
    %c0_40 = arith.constant 0 : index
    %c0_41 = arith.constant 0 : index
    %c0_42 = arith.constant 0 : index
    %167 = vector.load %arg11[%c0_40, %c0_41, %c0_42] : memref<1x8x64xf32, #tpu.memory_space<vmem>>, vector<1x8x64xf32>
    %168 = vector.shape_cast %167 : vector<1x8x64xf32> to vector<8x64xf32>
    %169 = vector.shape_cast %166 : vector<8x64xf32> to vector<1x8x64xf32>
    tpu.vector_store %arg11[%c0_40, %c0_41, %c0_42], %169 {strides = array<i32>} : memref<1x8x64xf32, #tpu.memory_space<vmem>>, vector<1x8x64xf32>,
    return
  }
  func.func @transform_0(%arg0: i32) -> (i32, i32, i32) {
    %c0_i32 = arith.constant 0 : i32
    %c0_i32_0 = arith.constant 0 : i32
    %c0_i32_1 = arith.constant 0 : i32
    return %arg0, %c0_i32, %c0_i32_0 : i32, i32, i32
  }
  func.func @transform_1(%arg0: i32) -> (i32, i32) {
    %c0_i32 = arith.constant 0 : i32
    %c0_i32_0 = arith.constant 0 : i32
    %c0_i32_1 = arith.constant 0 : i32
    return %c0_i32, %c0_i32_0 : i32, i32
  }
  func.func @transform_2(%arg0: i32) -> (i32, i32) {
    %c0_i32 = arith.constant 0 : i32
    %c0_i32_0 = arith.constant 0 : i32
    %c0_i32_1 = arith.constant 0 : i32
    return %c0_i32, %c0_i32_0 : i32, i32
  }
  func.func @transform_3(%arg0: i32) -> (i32, i32) {
    %c0_i32 = arith.constant 0 : i32
    %c0_i32_0 = arith.constant 0 : i32
    %c0_i32_1 = arith.constant 0 : i32
    return %c0_i32, %c0_i32_0 : i32, i32
  }
  func.func @transform_4(%arg0: i32) -> (i32, i32) {
    %c0_i32 = arith.constant 0 : i32
    %c0_i32_0 = arith.constant 0 : i32
    %c0_i32_1 = arith.constant 0 : i32
    return %c0_i32, %c0_i32_0 : i32, i32
  }
  func.func @transform_5(%arg0: i32) -> (i32, i32) {
    %c0_i32 = arith.constant 0 : i32
    %c0_i32_0 = arith.constant 0 : i32
    %c0_i32_1 = arith.constant 0 : i32
    return %c0_i32, %c0_i32_0 : i32, i32
  }
  func.func @transform_6(%arg0: i32) -> (i32, i32) {
    %c0_i32 = arith.constant 0 : i32
    %c0_i32_0 = arith.constant 0 : i32
    %c0_i32_1 = arith.constant 0 : i32
    return %c0_i32, %c0_i32_0 : i32, i32
  }
  func.func @transform_7(%arg0: i32) -> (i32, i32) {
    %c0_i32 = arith.constant 0 : i32
    %c0_i32_0 = arith.constant 0 : i32
    %c0_i32_1 = arith.constant 0 : i32
    return %c0_i32, %c0_i32_0 : i32, i32
  }
  func.func @transform_8(%arg0: i32) -> (i32, i32) {
    %c0_i32 = arith.constant 0 : i32
    %c0_i32_0 = arith.constant 0 : i32
    %c0_i32_1 = arith.constant 0 : i32
    return %c0_i32, %c0_i32_0 : i32, i32
  }
  func.func @transform_9(%arg0: i32) -> (i32, i32) {
    %c0_i32 = arith.constant 0 : i32
    %c0_i32_0 = arith.constant 0 : i32
    %c0_i32_1 = arith.constant 0 : i32
    return %c0_i32, %c0_i32_0 : i32, i32
  }
  func.func @transform_10(%arg0: i32) -> (i32, i32, i32) {
    %c0_i32 = arith.constant 0 : i32
    %c0_i32_0 = arith.constant 0 : i32
    %c0_i32_1 = arith.constant 0 : i32
    return %arg0, %c0_i32, %c0_i32_0 : i32, i32, i32
  }
}

module attributes {stable_mosaic.version = 11 : i64} {
  func.func @_linear_kernel(%arg0: i32, %arg1: memref<16x256xf32, #tpu.memory_space<vmem>>, %arg2: memref<256x64xf32, #tpu.memory_space<vmem>>, %arg3: memref<1x64xf32, #tpu.memory_space<vmem>>, %arg4: memref<16x64xf32, #tpu.memory_space<vmem>>) attributes {dimension_semantics = [#tpu.dimension_semantics<parallel>], iteration_bounds = array<i64: 1>, scalar_prefetch = 0 : i64, scratch_operands = 0 : i64, tpu.core_type = #tpu.core_type<tc>, window_params = [{transform_indices = @transform_0, window_bounds = array<i64: 16, 256>}, {pipeline_mode = #tpu.pipeline_mode<synchronous>, transform_indices = @transform_1, window_bounds = array<i64: 256, 64>}, {pipeline_mode = #tpu.pipeline_mode<synchronous>, transform_indices = @transform_2, window_bounds = array<i64: 1, 64>}, {transform_indices = @transform_3, window_bounds = array<i64: 16, 64>}]} {
    %c0 = arith.constant 0 : index
    %c0_0 = arith.constant 0 : index
    %0 = vector.load %arg1[%c0, %c0_0] : memref<16x256xf32, #tpu.memory_space<vmem>>, vector<16x256xf32>
    %c0_1 = arith.constant 0 : index
    %c0_2 = arith.constant 0 : index
    %1 = vector.load %arg2[%c0_1, %c0_2] : memref<256x64xf32, #tpu.memory_space<vmem>>, vector<256x64xf32>
    %cst = arith.constant dense<0.000000e+00> : vector<16x64xf32>
    %2 = tpu.matmul %0, %1, %cst {dimension_numbers = #tpu.dot_dimension_numbers<[1], [0], [0], [1], [0, 0, 1, 1], [], []>} : vector<16x256xf32>, vector<256x64xf32>, vector<16x64xf32> -> vector<16x64xf32>
    %c0_3 = arith.constant 0 : index
    %c0_4 = arith.constant 0 : index
    %3 = vector.load %arg3[%c0_3, %c0_4] : memref<1x64xf32, #tpu.memory_space<vmem>>, vector<1x64xf32>
    %4 = vector.broadcast %3 : vector<1x64xf32> to vector<16x64xf32>
    %5 = arith.addf %2, %4 : vector<16x64xf32>
    %c0_5 = arith.constant 0 : index
    %c0_6 = arith.constant 0 : index
    %6 = vector.load %arg4[%c0_5, %c0_6] : memref<16x64xf32, #tpu.memory_space<vmem>>, vector<16x64xf32>
    tpu.vector_store %arg4[%c0_5, %c0_6], %5 {strides = array<i32>} : memref<16x64xf32, #tpu.memory_space<vmem>>, vector<16x64xf32>,
    return
  }
  func.func @transform_0(%arg0: i32) -> (i32, i32) {
    %c0_i32 = arith.constant 0 : i32
    %c0_i32_0 = arith.constant 0 : i32
    return %arg0, %c0_i32 : i32, i32
  }
  func.func @transform_1(%arg0: i32) -> (i32, i32) {
    %c0_i32 = arith.constant 0 : i32
    %c0_i32_0 = arith.constant 0 : i32
    %c0_i32_1 = arith.constant 0 : i32
    return %c0_i32, %c0_i32_0 : i32, i32
  }
  func.func @transform_2(%arg0: i32) -> (i32, i32) {
    %c0_i32 = arith.constant 0 : i32
    %c0_i32_0 = arith.constant 0 : i32
    %c0_i32_1 = arith.constant 0 : i32
    return %c0_i32, %c0_i32_0 : i32, i32
  }
  func.func @transform_3(%arg0: i32) -> (i32, i32) {
    %c0_i32 = arith.constant 0 : i32
    %c0_i32_0 = arith.constant 0 : i32
    return %arg0, %c0_i32 : i32, i32
  }
}

module attributes {stable_mosaic.version = 11 : i64} {
  func.func @_rmsnorm_kernel(%arg0: i32, %arg1: memref<16x64xf32, #tpu.memory_space<vmem>>, %arg2: memref<1x64xf32, #tpu.memory_space<vmem>>, %arg3: memref<16x64xf32, #tpu.memory_space<vmem>>) attributes {dimension_semantics = [#tpu.dimension_semantics<parallel>], iteration_bounds = array<i64: 1>, scalar_prefetch = 0 : i64, scratch_operands = 0 : i64, tpu.core_type = #tpu.core_type<tc>, window_params = [{transform_indices = @transform_0, window_bounds = array<i64: 16, 64>}, {pipeline_mode = #tpu.pipeline_mode<synchronous>, transform_indices = @transform_1, window_bounds = array<i64: 1, 64>}, {transform_indices = @transform_2, window_bounds = array<i64: 16, 64>}]} {
    %c0 = arith.constant 0 : index
    %c0_0 = arith.constant 0 : index
    %0 = vector.load %arg1[%c0, %c0_0] : memref<16x64xf32, #tpu.memory_space<vmem>>, vector<16x64xf32>
    %1 = arith.mulf %0, %0 : vector<16x64xf32>
    %cst = arith.constant dense<0.000000e+00> : vector<16xf32>
    %2 = vector.multi_reduction <add>, %1, %cst [1] : vector<16x64xf32> to vector<16xf32>
    %3 = vector.shape_cast %2 : vector<16xf32> to vector<16x1xf32>
    %cst_1 = arith.constant 6.400000e+01 : f32
    %4 = vector.broadcast %cst_1 : f32 to vector<16x1xf32>
    %5 = arith.divf %3, %4 : vector<16x1xf32>
    %cst_2 = arith.constant 9.99999974E-6 : f32
    %6 = vector.broadcast %cst_2 : f32 to vector<16x1xf32>
    %7 = arith.addf %5, %6 : vector<16x1xf32>
    %8 = math.rsqrt %7 : vector<16x1xf32>
    %9 = vector.broadcast %8 : vector<16x1xf32> to vector<16x64xf32>
    %10 = arith.mulf %0, %9 : vector<16x64xf32>
    %c0_3 = arith.constant 0 : index
    %c0_4 = arith.constant 0 : index
    %11 = vector.load %arg2[%c0_3, %c0_4] : memref<1x64xf32, #tpu.memory_space<vmem>>, vector<1x64xf32>
    %12 = vector.broadcast %11 : vector<1x64xf32> to vector<16x64xf32>
    %13 = arith.mulf %10, %12 : vector<16x64xf32>
    %c0_5 = arith.constant 0 : index
    %c0_6 = arith.constant 0 : index
    %14 = vector.load %arg3[%c0_5, %c0_6] : memref<16x64xf32, #tpu.memory_space<vmem>>, vector<16x64xf32>
    tpu.vector_store %arg3[%c0_5, %c0_6], %13 {strides = array<i32>} : memref<16x64xf32, #tpu.memory_space<vmem>>, vector<16x64xf32>,
    return
  }
  func.func @transform_0(%arg0: i32) -> (i32, i32) {
    %c0_i32 = arith.constant 0 : i32
    %c0_i32_0 = arith.constant 0 : i32
    return %arg0, %c0_i32 : i32, i32
  }
  func.func @transform_1(%arg0: i32) -> (i32, i32) {
    %c0_i32 = arith.constant 0 : i32
    %c0_i32_0 = arith.constant 0 : i32
    %c0_i32_1 = arith.constant 0 : i32
    return %c0_i32, %c0_i32_0 : i32, i32
  }
  func.func @transform_2(%arg0: i32) -> (i32, i32) {
    %c0_i32 = arith.constant 0 : i32
    %c0_i32_0 = arith.constant 0 : i32
    return %arg0, %c0_i32 : i32, i32
  }
}

</mosaic_0001>

<bundles_post_ra>
// kernel: mamba_forward.9
= control target key start
LH: loop header
LB: loop body
LE: loop exit
PB: predicated region body
PF: predicated region fallthrough
CT: control target
= control target key end

     0   :  { %vm16_vm0 = vcmask 523264   ;;  %s123_s0 = inlined_call_operand.vmem [shape: f32[16,64], index: 0, kind: input, shape index: {}]   ;;  %s124_s1 = inlined_call_operand.vmem [shape: f32[1,64], index: 1, kind: input, shape index: {}]   ;;  %s125_s2 = inlined_call_operand.hbm [shape: f32[16,64], index: 2, kind: output, shape index: {}]  }
   0x1   :  { %v12_v0 = vld [vmem:[%s123_s0] sm:$0xff]  ;;  %v13_v1 = vld [vmem:[%s123_s0 + $0x8] sm:$0xff] }
   0x2   :  { %7 = vsyncpa [#allocation3], 0  ;;  %v14_v2 = vmul.f32 %v12_v0, %v12_v0  ;;  %v15_v3 = vmul.f32 %v13_v1, %v13_v1  ;;  %v59_v13 = vld [vmem:[%s124_s1] ss:$0 sm:$0xff]  ;;  %s89_s14 = smov [#allocation2]  }
   0x3   :  { %s48_s15 = sshll.u32 %s89_s14, 4  ;;  %s49_s15 = int_to_ptr.vmem [resolvable:$true] %s48_s15 }
   0x4   :  { %v17_v4 = vsel %vm16_vm0, %v14_v2, 0.0  ;;  %v20_v5 = vsel %vm16_vm0, %v15_v3, 0.0  ;;  %s67_s16 = scalar_lea.vmem %s49_s15, 256  ;;  %p72_p1 = scmp.lt.s32.totalorder %s49_s15, %s49_s15 }
   0x5   :  { %18 = vadd.xlane.f32.xlu0 %v17_v4  ;;  %p68_p0 = scmp.ne.s32.totalorder %s49_s15, %s67_s16  ;;  %p73_p2 = scmp.lt.s32.totalorder %s67_s16, %s67_s16 }
   0x7   :  { %p74_p3 = por %p73_p2, %p72_p1 }
   0x9   :  { %21 = vadd.xlane.f32.xlu0 %v20_v5  ;;  %p75_p4 = pnand %p74_p3, %p68_p0 }
  0x8e   :  { %v19_v6 = vpop.xlane.xlu0 %18 }
  0x8f   :  { %v24_v7 = vmul.f32 0.015625, %v19_v6 }
  0x91   :  { %v26_v8 = vadd.f32 1e-05, %v24_v7 }
  0x92   :  { %v22_v9 = vpop.xlane.xlu0 %21 }
  0x93   :  { %63 = vrsqrt.f32 %v26_v8  ;;  %v25_v10 = vmul.f32 0.015625, %v22_v9 }
  0x95   :  { %v27_v11 = vadd.f32 1e-05, %v25_v10 }
  0x97   :  { %65 = vrsqrt.f32 %v27_v11 }
  0xa0   :  { %v64_v12 = vpop.eup %63 }
  0xa1   :  { %v30_v14 = vmul.f32 %v64_v12, %v12_v0 }
  0xa3   :  { %v39_v15 = vmul.f32 %v59_v13, %v30_v14 }
  0xa4   :  { %v66_v16 = vpop.eup %65 }
  0xa5   :  { %v31_v17 = vmul.f32 %v66_v16, %v13_v1  ;;  %41 = vst.msk [vmem:[#allocation2] sm:$0xff] %vm16_vm0, %v39_v15 }
  0xa7   :  { %v40_v18 = vmul.f32 %v59_v13, %v31_v17 }
  0xa9   :  { %42 = vst.msk [vmem:[#allocation2 + $0x8] sm:$0xff] %vm16_vm0, %v40_v18 }
  0xaa   :  { %78 = shalt.err (!%p75_p4)
}
  0xab   :  { %s90_s1 = smov 128   ;;  %s91_s17 = smov 8  }
  0xac   :  { %54 = dma.vmem_to_hbm [thread:$0]  %s49_s15, 256, %s125_s2, [#allocation3], %s90_s1, %s90_s1, %s91_s17  }
  0xad   :  { %87 = dma.done.wait [#allocation3], 256  }
  0xae   :  { %88 = vsyncadd [#allocation3], 4294967040 }
  0xaf   :  { %58 = vsyncpa [#allocation3], 1 }

// kernel: mamba_forward.5
= control target key start
LH: loop header
LB: loop body
LE: loop exit
PB: predicated region body
PF: predicated region fallthrough
CT: control target
= control target key end

     0   :  { %vm132_vm0 = vcmask 523264   ;;  %s347_s1 = inlined_call_operand.vmem [shape: f32[256,64], index: 1, kind: input, shape index: {}]   ;;  %s348_s0 = inlined_call_operand.vmem [shape: f32[16,256], index: 0, kind: input, shape index: {}]   ;;  %s349_s2 = inlined_call_operand.vmem [shape: f32[1,64], index: 2, kind: input, shape index: {}]   ;;  %s350_s3 = inlined_call_operand.vmem [shape: f32[16,64], index: 3, kind: output, shape index: {}]  }
   0x1   :  { %v49_v0 = vld [vmem:[%s347_s1 + $0xf8] sm:$0xff]  ;;  %v48_v2 = vld [vmem:[%s347_s1 + $0xf0] sm:$0xff]  ;;  %v47_v4 = vld [vmem:[%s347_s1 + $0xe8] sm:$0xff] }
   0x2   :  { %v33_v1 = vld [vmem:[%s347_s1 + $0x78] sm:$0xff]  ;;  %140 = vmatprep.subr.mxu0 %v49_v0  ;;  %178 = vmatprep.subr.mxu1 %v49_v0  ;;  %v32_v3 = vld [vmem:[%s347_s1 + $0x70] sm:$0xff]  ;;  %v31_v5 = vld [vmem:[%s347_s1 + $0x68] sm:$0xff] }
   0x3   :  { %141 = vmatpush3.msra.mxu0 %v33_v1  ;;  %194 = vmatpush3.msra.mxu1 %v33_v1  ;;  %v46_v6 = vld [vmem:[%s347_s1 + $0xe0] sm:$0xff]  ;;  %v45_v8 = vld [vmem:[%s347_s1 + $0xd8] sm:$0xff]  ;;  %v44_v10 = vld [vmem:[%s347_s1 + $0xd0] sm:$0xff] }
   0x4   :  { %142 = vmatprep.subr.mxu0 %v48_v2  ;;  %179 = vmatprep.subr.mxu1 %v48_v2  ;;  %v30_v7 = vld [vmem:[%s347_s1 + $0x60] sm:$0xff]  ;;  %v29_v9 = vld [vmem:[%s347_s1 + $0x58] sm:$0xff]  ;;  %v28_v11 = vld [vmem:[%s347_s1 + $0x50] sm:$0xff] }
   0x5   :  { %143 = vmatpush3.msra.mxu0 %v32_v3  ;;  %195 = vmatpush3.msra.mxu1 %v32_v3  ;;  %v43_v12 = vld [vmem:[%s347_s1 + $0xc8] sm:$0xff]  ;;  %v42_v14 = vld [vmem:[%s347_s1 + $0xc0] sm:$0xff]  ;;  %v41_v16 = vld [vmem:[%s347_s1 + $0xb8] sm:$0xff] }
   0x6   :  { %144 = vmatprep.subr.mxu0 %v47_v4  ;;  %180 = vmatprep.subr.mxu1 %v47_v4  ;;  %v27_v13 = vld [vmem:[%s347_s1 + $0x48] sm:$0xff]  ;;  %v26_v15 = vld [vmem:[%s347_s1 + $0x40] sm:$0xff]  ;;  %v25_v17 = vld [vmem:[%s347_s1 + $0x38] sm:$0xff] }
   0x7   :  { %145 = vmatpush3.msra.mxu0 %v31_v5  ;;  %196 = vmatpush3.msra.mxu1 %v31_v5  ;;  %v40_v18 = vld [vmem:[%s347_s1 + $0xb0] sm:$0xff]  ;;  %v39_v20 = vld [vmem:[%s347_s1 + $0xa8] sm:$0xff]  ;;  %v38_v22 = vld [vmem:[%s347_s1 + $0xa0] sm:$0xff] }
   0x8   :  { %146 = vmatprep.subr.mxu0 %v46_v6  ;;  %181 = vmatprep.subr.mxu1 %v46_v6  ;;  %v24_v19 = vld [vmem:[%s347_s1 + $0x30] sm:$0xff]  ;;  %v23_v21 = vld [vmem:[%s347_s1 + $0x28] sm:$0xff]  ;;  %v22_v23 = vld [vmem:[%s347_s1 + $0x20] sm:$0xff] }
   0x9   :  { %147 = vmatpush3.msra.mxu0 %v30_v7  ;;  %197 = vmatpush3.msra.mxu1 %v30_v7  ;;  %v37_v24 = vld [vmem:[%s347_s1 + $0x98] sm:$0xff]  ;;  %v36_v26 = vld [vmem:[%s347_s1 + $0x90] sm:$0xff]  ;;  %v35_v28 = vld [vmem:[%s347_s1 + $0x88] sm:$0xff] }
   0xa   :  { %148 = vmatprep.subr.mxu0 %v45_v8  ;;  %182 = vmatprep.subr.mxu1 %v45_v8  ;;  %v21_v25 = vld [vmem:[%s347_s1 + $0x18] sm:$0xff]  ;;  %v20_v27 = vld [vmem:[%s347_s1 + $0x10] sm:$0xff]  ;;  %v19_v29 = vld [vmem:[%s347_s1 + $0x8] sm:$0xff] }
   0xb   :  { %149 = vmatpush3.msra.mxu0 %v29_v9  ;;  %198 = vmatpush3.msra.mxu1 %v29_v9  ;;  %v34_v30 = vld [vmem:[%s347_s1 + $0x80] sm:$0xff]  ;;  %v15_v32 = vld [vmem:[%s348_s0 + $0x8] sm:$0xff]  ;;  %v17_v33 = vld [vmem:[%s348_s0 + $0x18] sm:$0xff] }
   0xc   :  { %150 = vmatprep.subr.mxu0 %v44_v10  ;;  %183 = vmatprep.subr.mxu1 %v44_v10  ;;  %v18_v31 = vld [vmem:[%s347_s1] sm:$0xff]  ;;  %v16_v35 = vld [vmem:[%s348_s0 + $0x10] sm:$0xff] }
   0xd   :  { %151 = vmatpush3.msra.mxu0 %v28_v11  ;;  %199 = vmatpush3.msra.mxu1 %v28_v11  ;;  %v14_v34 = vld [vmem:[%s348_s0] sm:$0xff] }
   0xe   :  { %152 = vmatprep.subr.mxu0 %v43_v12  ;;  %184 = vmatprep.subr.mxu1 %v43_v12  ;;  %v139_v38 = vld [vmem:[%s349_s2] ss:$0 sm:$0xff] }
   0xf   :  { %153 = vmatpush3.msra.mxu0 %v27_v13  ;;  %200 = vmatpush3.msra.mxu1 %v27_v13 }
  0x10   :  { %154 = vmatprep.subr.mxu0 %v42_v14  ;;  %185 = vmatprep.subr.mxu1 %v42_v14 }
  0x11   :  { %155 = vmatpush3.msra.mxu0 %v26_v15  ;;  %201 = vmatpush3.msra.mxu1 %v26_v15 }
  0x12   :  { %156 = vmatprep.subr.mxu0 %v41_v16  ;;  %186 = vmatprep.subr.mxu1 %v41_v16 }
  0x13   :  { %157 = vmatpush3.msra.mxu0 %v25_v17  ;;  %202 = vmatpush3.msra.mxu1 %v25_v17 }
  0x14   :  { %158 = vmatprep.subr.mxu0 %v40_v18  ;;  %187 = vmatprep.subr.mxu1 %v40_v18 }
  0x15   :  { %159 = vmatpush3.msra.mxu0 %v24_v19  ;;  %203 = vmatpush3.msra.mxu1 %v24_v19 }
  0x16   :  { %160 = vmatprep.subr.mxu0 %v39_v20  ;;  %188 = vmatprep.subr.mxu1 %v39_v20 }
  0x17   :  { %161 = vmatpush3.msra.mxu0 %v23_v21  ;;  %204 = vmatpush3.msra.mxu1 %v23_v21 }
  0x18   :  { %162 = vmatprep.subr.mxu0 %v38_v22  ;;  %189 = vmatprep.subr.mxu1 %v38_v22 }
  0x19   :  { %163 = vmatpush3.msra.mxu0 %v22_v23  ;;  %205 = vmatpush3.msra.mxu1 %v22_v23 }
  0x1a   :  { %164 = vmatprep.subr.mxu0 %v37_v24  ;;  %190 = vmatprep.subr.mxu1 %v37_v24 }
  0x1b   :  { %165 = vmatpush3.msra.mxu0 %v21_v25  ;;  %206 = vmatpush3.msra.mxu1 %v21_v25 }
  0x1c   :  { %166 = vmatprep.subr.mxu0 %v36_v26  ;;  %191 = vmatprep.subr.mxu1 %v36_v26 }
  0x1d   :  { %167 = vmatpush3.msra.mxu0 %v20_v27  ;;  %207 = vmatpush3.msra.mxu1 %v20_v27 }
  0x1e   :  { %168 = vmatprep.subr.mxu0 %v35_v28  ;;  %192 = vmatprep.subr.mxu1 %v35_v28 }
  0x1f   :  { %169 = vmatpush3.msra.mxu0 %v19_v29  ;;  %208 = vmatpush3.msra.mxu1 %v19_v29 }
  0x20   :  { %170 = vmatprep.subr.mxu0 %v34_v30  ;;  %193 = vmatprep.subr.mxu1 %v34_v30 }
  0x21   :  { %171 = vmatpush3.msra.mxu0 %v18_v31  ;;  %209 = vmatpush3.msra.mxu1 %v18_v31 }
  0x22   :  { %121 = vmatprep.mubr.f32.mxu0 %v15_v32  ;;  %126 = vmatprep.mubr.f32.mxu1 %v17_v33 }
  0x23   :  { %122 = vmatmul.mubr.f32.vlgmr.msra.gmra.mxu0 %v14_v34  ;;  %127 = vmatmul.mubr.f32.vlgmr.msra.gmra.mxu1 %v16_v35 }
  0xe3   :  { %v172_v36 = vpop.f32.mrf.mxu0  ;;  %v175_v37 = vpop.f32.mrf.mxu1 }
  0xe5   :  { %v173_v39 = vpop.f32.mrf.mxu0  ;;  %v176_v40 = vpop.f32.mrf.mxu1 }
  0xe6   :  { %v174_v41 = vadd.f32 %v173_v39, %v172_v36  ;;  %v177_v42 = vadd.f32 %v176_v40, %v175_v37 }
  0xe8   :  { %v124_v43 = vadd.f32 %v174_v41, %v139_v38  ;;  %v129_v44 = vadd.f32 %v177_v42, %v139_v38 }
  0xea   :  { %133 = vst.msk [vmem:[%s350_s3] sm:$0xff] %vm132_vm0, %v124_v43  ;;  %134 = vst.msk [vmem:[%s350_s3 + $0x8] sm:$0xff] %vm132_vm0, %v129_v44 }

// kernel: mamba_forward.6
= control target key start
LH: loop header
LB: loop body
LE: loop exit
PB: predicated region body
PF: predicated region fallthrough
CT: control target
= control target key end

     0   :  { %s2829_s13 = smov 0   ;;  %s3843_s0 = inlined_call_operand.vmem [shape: f32[2,8,64], index: 0, kind: input, shape index: {}]   ;;  %s3844_s1 = inlined_call_operand.vmem [shape: f32[1,64], index: 1, kind: input, shape index: {}]   ;;  %s3845_s2 = inlined_call_operand.vmem [shape: f32[64,256], index: 2, kind: input, shape index: {}]   ;;  %s3846_s3 = inlined_call_operand.vmem [shape: f32[4,128], index: 3, kind: input, shape index: {}]   ;;  %s3847_s4 = inlined_call_operand.vmem [shape: f32[1,128], index: 4, kind: input, shape index: {}]   ;;  %s3848_s5 = inlined_call_operand.vmem [shape: f32[128,256], index: 5, kind: input, shape index: {}]   ;;  %s3849_s6 = inlined_call_operand.vmem [shape: f32[1,256], index: 6, kind: input, shape index: {}]   ;;  %s3850_s7 = inlined_call_operand.vmem [shape: f32[64,128], index: 7, kind: input, shape index: {}]   ;;  %s3851_s8 = inlined_call_operand.vmem [shape: f32[1,128], index: 8, kind: input, shape index: {}]   ;;  %s3852_s9 = inlined_call_operand.vmem [shape: f32[128,64], index: 9, kind: input, shape index: {}]   ;;  %s3853_s10 = inlined_call_operand.vmem [shape: f32[2,8,64], index: 10, kind: output, shape index: {}]  }
   0x1 LB: > { %s2308_s14 = sadd.s32 4294967295, %s2768_s13   ;;  %p2312_p0 = scmp.ge.s32.totalorder %s2768_s13, 1  ;;  %s2768_s13 = sphi %s2829_s13, %s20_s13  }
   0x2   : > { %p311_p1 = scmp.lt.s32.totalorder %s2768_s13, 3 }
   0x4   : > { %p312_p2 = pnand %p2312_p0, %p311_p1 }
   0x6   : > { %315 = sbr.rel (%p312_p2) target bundleno = 1282 (0x502), region = 60 }
   0xb   : > { %p347_p3 = scmp.lt.s32.totalorder %s2308_s14, 1  ;;  %vm357_vm0 = vcmask 523264   ;;  %v389_v3 = vld [vmem:[%s3845_s2 + $0x78] sm:$0xff]  ;;  %v388_v4 = vld [vmem:[%s3845_s2 + $0x70] sm:$0xff]  ;;  %v387_v5 = vld [vmem:[%s3845_s2 + $0x68] sm:$0xff]  ;;  %v3854_v7 = vmov 0.0   ;;  %v478_v59 = vlaneseq }
   0xc   : > { %409 = vmatprep.subr.mxu0 %v389_v3  ;;  %v386_v6 = vld [vmem:[%s3845_s2 + $0x60] sm:$0xff]  ;;  %457 = vmatprep.mubr.f32.mxu0 %v3854_v7  ;;  %v385_v8 = vld [vmem:[%s3845_s2 + $0x58] sm:$0xff]  ;;  %v384_v9 = vld [vmem:[%s3845_s2 + $0x50] sm:$0xff]  ;;  %vm468_vm1 = vcmask 1042432   ;;  %vm492_vm2 = vcmask 1046528   ;;  %vm506_vm3 = vcmask 1045504  }
   0xd   : > { %s3896_s14 = smov (!%p347_p3, %s2308_s14), 1  ;;  %410 = vmatpush1.msra.mxu0 %v388_v4  ;;  %641 = vmatprep.mubr.f32.mxu1 %v3854_v7  ;;  %v383_v10 = vld [vmem:[%s3845_s2 + $0x48] sm:$0xff]  ;;  %v382_v11 = vld [vmem:[%s3845_s2 + $0x40] sm:$0xff]  ;;  %v381_v12 = vld [vmem:[%s3845_s2 + $0x38] sm:$0xff]  ;;  %v3001_v60 = vshrl.u32 %v478_v59, 7  ;;  %vm520_vm4 = vcmask 1044480  }
   0xe   : > { %s2313_s15 = sshll.u32 %s3896_s14, 3  ;;  %411 = vmatprep.subr.mxu0 %v387_v5  ;;  %v380_v13 = vld [vmem:[%s3845_s2 + $0x30] sm:$0xff]  ;;  %v379_v14 = vld [vmem:[%s3845_s2 + $0x28] sm:$0xff]  ;;  %v378_v15 = vld [vmem:[%s3845_s2 + $0x20] sm:$0xff]  ;;  %s2771_s27 = smov 64   ;;  %vm2772_vm5 = vmmov 0  }
   0xf   : > { %s2845_s18 = scalar_lea.vmem %s3843_s0, %s2313_s15  ;;  %412 = vmatpush1.msra.mxu0 %v386_v6  ;;  %v377_v16 = vld [vmem:[%s3845_s2 + $0x18] sm:$0xff]  ;;  %v376_v17 = vld [vmem:[%s3845_s2 + $0x10] sm:$0xff]  ;;  %v375_v18 = vld [vmem:[%s3845_s2 + $0x8] sm:$0xff]  ;;  %v486_v61 = vsub.s32 1, %v3001_v60  ;;  %v500_v62 = vsub.s32 2, %v3001_v60  ;;  %vm2140_vm8 = vcmask 1040384   ;;  %s354_s12 = scalar_lea.vmem %s3853_s10, %s2313_s15 }
  0x10   : > { %v355_v0 = vld [vmem:[%s2845_s18] sm:$0xff]  ;;  %413 = vmatprep.subr.mxu0 %v385_v8  ;;  %v564_v27 = vld [vmem:[%s3848_s5 + $0xf8] sm:$0xff]  ;;  %v563_v28 = vld [vmem:[%s3848_s5 + $0xf0] sm:$0xff]  ;;  %vm2142_vm9 = vcmask 1041408   ;;  %vm2145_vm10 = vcmask 1043456  }
  0x11   : > { %v356_v1 = vmul.f32 %v355_v0, %v355_v0  ;;  %414 = vmatpush1.msra.mxu0 %v384_v9  ;;  %v374_v19 = vld [vmem:[%s3845_s2] sm:$0xff]  ;;  %577 = vmatprep.subr.mxu1 %v564_v27  ;;  %v562_v29 = vld [vmem:[%s3848_s5 + $0xe8] sm:$0xff]  ;;  %v560_v31 = vld [vmem:[%s3848_s5 + $0xd8] sm:$0xff] }
  0x12   : > { %415 = vmatprep.subr.mxu0 %v383_v10  ;;  %v2315_v24 = vld [vmem:[%s3844_s1] ss:$0 sm:$0xff]  ;;  %578 = vmatpush1.msra.mxu1 %v563_v28  ;;  %v559_v32 = vld [vmem:[%s3848_s5 + $0xd0] sm:$0xff]  ;;  %v558_v33 = vld [vmem:[%s3848_s5 + $0xc8] sm:$0xff] }
  0x13   : > { %v358_v2 = vsel %vm357_vm0, %v356_v1, 0.0  ;;  %416 = vmatpush1.msra.mxu0 %v382_v11  ;;  %579 = vmatprep.subr.mxu1 %v562_v29  ;;  %v561_v30 = vld [vmem:[%s3848_s5 + $0xe0] sm:$0xff]  ;;  %v556_v35 = vld [vmem:[%s3848_s5 + $0xb8] sm:$0xff]  ;;  %v555_v36 = vld [vmem:[%s3848_s5 + $0xb0] sm:$0xff]  ;;  %v514_v1 = vsub.s32 3, %v3001_v60 }
  0x14   : > { %359 = vadd.xlane.f32.xlu0 %v358_v2  ;;  %417 = vmatprep.subr.mxu0 %v381_v12  ;;  %v557_v34 = vld [vmem:[%s3848_s5 + $0xc0] sm:$0xff]  ;;  %v554_v37 = vld [vmem:[%s3848_s5 + $0xa8] sm:$0xff]  ;;  %v552_v39 = vld [vmem:[%s3848_s5 + $0x98] sm:$0xff] }
  0x15   : > { %418 = vmatpush1.msra.mxu0 %v380_v13  ;;  %580 = vmatpush1.msra.mxu1 %v561_v30  ;;  %v553_v38 = vld [vmem:[%s3848_s5 + $0xa0] sm:$0xff]  ;;  %v551_v40 = vld [vmem:[%s3848_s5 + $0x90] sm:$0xff]  ;;  %v550_v41 = vld [vmem:[%s3848_s5 + $0x88] sm:$0xff] }
  0x16   : > { %419 = vmatprep.subr.mxu0 %v379_v14  ;;  %581 = vmatprep.subr.mxu1 %v560_v31  ;;  %v549_v42 = vld [vmem:[%s3848_s5 + $0x80] sm:$0xff]  ;;  %v548_v43 = vld [vmem:[%s3848_s5 + $0x78] sm:$0xff]  ;;  %v547_v44 = vld [vmem:[%s3848_s5 + $0x70] sm:$0xff] }
  0x17   : > { %420 = vmatpush1.msra.mxu0 %v378_v15  ;;  %582 = vmatpush1.msra.mxu1 %v559_v32  ;;  %v546_v45 = vld [vmem:[%s3848_s5 + $0x68] sm:$0xff]  ;;  %v545_v46 = vld [vmem:[%s3848_s5 + $0x60] sm:$0xff]  ;;  %v544_v47 = vld [vmem:[%s3848_s5 + $0x58] sm:$0xff] }
  0x18   : > { %421 = vmatprep.subr.mxu0 %v377_v16  ;;  %583 = vmatprep.subr.mxu1 %v558_v33  ;;  %v543_v48 = vld [vmem:[%s3848_s5 + $0x50] sm:$0xff]  ;;  %v542_v49 = vld [vmem:[%s3848_s5 + $0x48] sm:$0xff]  ;;  %v541_v50 = vld [vmem:[%s3848_s5 + $0x40] sm:$0xff] }
  0x19   : > { %422 = vmatpush1.msra.mxu0 %v376_v17  ;;  %584 = vmatpush1.msra.mxu1 %v557_v34  ;;  %v540_v51 = vld [vmem:[%s3848_s5 + $0x38] sm:$0xff]  ;;  %v539_v52 = vld [vmem:[%s3848_s5 + $0x30] sm:$0xff]  ;;  %v538_v53 = vld [vmem:[%s3848_s5 + $0x28] sm:$0xff] }
  0x1a   : > { %423 = vmatprep.subr.mxu0 %v375_v18  ;;  %585 = vmatprep.subr.mxu1 %v556_v35  ;;  %v537_v54 = vld [vmem:[%s3848_s5 + $0x20] sm:$0xff]  ;;  %v536_v55 = vld [vmem:[%s3848_s5 + $0x18] sm:$0xff]  ;;  %v535_v56 = vld [vmem:[%s3848_s5 + $0x10] sm:$0xff] }
  0x1b   : > { %424 = vmatpush1.msra.mxu0 %v374_v19  ;;  %586 = vmatpush1.msra.mxu1 %v555_v36  ;;  %v534_v57 = vld [vmem:[%s3848_s5 + $0x8] sm:$0xff]  ;;  %v533_v58 = vld [vmem:[%s3848_s5] sm:$0xff] }
  0x1c   : > { %2420 = vmatprep.subr.mxu0 %v3854_v7  ;;  %587 = vmatprep.subr.mxu1 %v554_v37  ;;  %v464_v63 = vld [vmem:[%s3846_s3] sm:$0xf] }
  0x1d   : > { %588 = vmatpush1.msra.mxu1 %v553_v38  ;;  %v487_v2 = vrot.slane %v464_v63, %v486_v61  ;;  %v501_v3 = vrot.slane %v464_v63, %v500_v62  ;;  %v515_v6 = vrot.slane %v464_v63, %v514_v1  ;;  %v2317_v12 = vld [vmem:[%s3847_s4] ss:$0 sm:$0xff] }
  0x1e   : > { %589 = vmatprep.subr.mxu1 %v552_v39  ;;  %v565_v36 = vld [vmem:[%s3849_s6] sm:$0x3] }
  0x1f   : > { %590 = vmatpush1.msra.mxu1 %v551_v40  ;;  %v574_v38 = vrot.slane %v565_v36, %v486_v61 }
  0x20   : > { %591 = vmatprep.subr.mxu1 %v550_v41 }
  0x21   : > { %592 = vmatpush1.msra.mxu1 %v549_v42 }
  0x22   : > { %593 = vmatprep.subr.mxu1 %v548_v43 }
  0x23   : > { %594 = vmatpush1.msra.mxu1 %v547_v44 }
  0x24   : > { %595 = vmatprep.subr.mxu1 %v546_v45 }
  0x25   : > { %596 = vmatpush1.msra.mxu1 %v545_v46 }
  0x26   : > { %597 = vmatprep.subr.mxu1 %v544_v47 }
  0x27   : > { %598 = vmatpush1.msra.mxu1 %v543_v48 }
  0x28   : > { %599 = vmatprep.subr.mxu1 %v542_v49 }
  0x29   : > { %600 = vmatpush1.msra.mxu1 %v541_v50 }
  0x2a   : > { %601 = vmatprep.subr.mxu1 %v540_v51 }
  0x2b   : > { %602 = vmatpush1.msra.mxu1 %v539_v52 }
  0x2c   : > { %603 = vmatprep.subr.mxu1 %v538_v53 }
  0x2d   : > { %604 = vmatpush1.msra.mxu1 %v537_v54 }
  0x2e   : > { %605 = vmatprep.subr.mxu1 %v536_v55  ;;  %v2773_v55 = vmov 1966171168  }
  0x2f   : > { %606 = vmatpush1.msra.mxu1 %v535_v56  ;;  %v678_v56 = vunpack.c.l.s4 %v2773_v55 }
  0x30   : > { %607 = vmatprep.subr.mxu1 %v534_v57 }
  0x31   : > { %608 = vmatpush1.msra.mxu1 %v533_v58 }
  0x32   : > { %2458 = vmatprep.subr.mxu1 %v3854_v7 }
  0x9d   : > { %v360_v20 = vpop.xlane.xlu0 %359 }
  0x9e   : > { %v362_v21 = vmul.f32 0.015625, %v360_v20 }
  0xa0   : > { %v363_v22 = vadd.f32 1e-05, %v362_v21 }
  0xa2   : > { %2619 = vrsqrt.f32 %v363_v22 }
  0xaf   : > { %v2620_v23 = vpop.eup %2619 }
  0xb0   : > { %v365_v25 = vmul.f32 %v2620_v23, %v355_v0  ;;  %v3009_v0 = vsub.s32 0, %v3001_v60 }
  0xb2   : > { %v373_v26 = vmul.f32 %v2315_v24, %v365_v25  ;;  %v481_v5 = vrot.slane %v464_v63, %v3009_v0  ;;  %v570_v37 = vrot.slane %v565_v36, %v3009_v0  ;;  %v679_v63 = vunpack.c.0.s8 %v678_v56 }
  0xb4   : > { %2316 = vmatmul.mubr.msk.f32.vlgmr.msra.gmra.mxu0 %vm357_vm0, %v373_v26 }
  0xb5   : > { %2436 = vmatprep.mubr.msk.f32.mxu0 %vm2772_vm5, %v3854_v7 }
 0x174   : > { %v459_v4 = vpop.f32.mrf.mxu0 }
 0x175   : > { %v466_v8 = vrot.slane %v459_v4, 5 }
 0x177   : > { %v469_v9 = vsel %vm468_vm1, 0.0, %v466_v8  ;;  %v489_v10 = vmul.f32 %v487_v2, %v466_v8  ;;  %v503_v11 = vmul.f32 %v501_v3, %v466_v8  ;;  %v517_v16 = vmul.f32 %v515_v6, %v466_v8 }
 0x178   : > { %v482_v13 = vmul.f32 %v481_v5, %v469_v9  ;;  %v488_v14 = vmul.f32 %v487_v2, %v469_v9  ;;  %v502_v15 = vmul.f32 %v501_v3, %v469_v9  ;;  %v516_v18 = vmul.f32 %v515_v6, %v469_v9 }
 0x179   : > { %v494_v17 = vrot.slane %v489_v10, 1  ;;  %v508_v21 = vrot.slane %v503_v11, 2  ;;  %v522_v23 = vrot.slane %v517_v16, 3  ;;  %v3052_v5 = vsub.s32 %v679_v63, %v3001_v60 }
 0x17a   : > { %v493_v19 = vrot.slane %v488_v14, 1  ;;  %v507_v20 = vrot.slane %v502_v15, 2  ;;  %v483_v22 = vadd.f32 %v2317_v12, %v482_v13  ;;  %v521_v25 = vrot.slane %v516_v18, 3 }
 0x17b   : > { %v1149_v16 = vsub.s32 4, %v3001_v60 }
 0x17c   : > { %v495_v24 = vsel %vm492_vm2, %v493_v19, %v494_v17  ;;  %v509_v27 = vsel %vm506_vm3, %v507_v20, %v508_v21  ;;  %v523_v29 = vsel %vm520_vm4, %v521_v25, %v522_v23  ;;  %v1184_v21 = vsub.s32 5, %v3001_v60 }
 0x17d   : > { %v497_v26 = vadd.f32 %v495_v24, %v483_v22  ;;  %v3077_v22 = vld [vmem:[%s3850_s7 + $0x28] sm:$0xff] }
 0x17f   : > { %v511_v28 = vadd.f32 %v509_v27, %v497_v26  ;;  %v3089_v26 = vld [vmem:[%s3850_s7 + $0x20] sm:$0xff] }
 0x181   : > { %v525_v30 = vadd.f32 %v523_v29, %v511_v28  ;;  %v3098_v28 = vld [vmem:[%s3850_s7 + $0x38] sm:$0xff] }
 0x183   : > { %v2318_v31 = vmul.f32 -1.442695, %v525_v30 }
 0x185   : > { %2621 = vpow2.f32 %v2318_v31 }
 0x192   : > { %v2622_v32 = vpop.eup %2621 }
 0x193   : > { %v529_v33 = vadd.f32 1.0, %v2622_v32  ;;  %v3109_v32 = vld [vmem:[%s3850_s7 + $0x30] sm:$0xff] }
 0x195   : > { %2623 = vrcp.f32 %v529_v33  ;;  %v3114_v33 = vld [vmem:[%s3850_s7 + $0x10] sm:$0xff] }
 0x1a2   : > { %v2624_v34 = vpop.eup %2623 }
 0x1a3   : > { %v3024_v35 = vmul.f32 %v2624_v34, %v525_v30  ;;  %v3119_v34 = vld [vmem:[%s3850_s7 + $0x8] sm:$0xff] }
 0x1a5   : > { %3858 = vst [vmem:[#allocation2_spill] sm:$0xff] %v3024_v35  ;;  %642 = vmatmul.mubr.f32.vlgmr.msra.gmra.mxu1 %v3024_v35 }
 0x1a6   : > { %2474 = vmatprep.mubr.msk.f32.mxu1 %vm2772_vm5, %v3854_v7 }
 0x265   : > { %v643_v39 = vpop.f32.mrf.mxu1 }
 0x266   : > { %v644_v40 = vadd.f32 %v643_v39, %v570_v37  ;;  %v3124_v37 = vld [vmem:[%s3850_s7] sm:$0xff] }
 0x267   : > { %v645_v41 = vpop.f32.mrf.mxu1 }
 0x268   : > { %v651_v42 = vand.u32 2147483647, %v644_v40  ;;  %v3031_v43 = vadd.f32 %v645_v41, %v574_v38  ;;  %vm649_vm7 = vcmp.ne.f32.partialorder %v644_v40, %v644_v40 }
 0x26a   : > { %v652_v44 = vsub.f32 0.0, %v651_v42  ;;  %1408 = vrot.lane.b32.xlu1 %v3031_v43, %s2771_s27  ;;  %v1010_v45 = vrot.slane %v3031_v43, %v3009_v0  ;;  %v1045_v47 = vrot.slane %v3031_v43, %v486_v61  ;;  %v1080_v50 = vrot.slane %v3031_v43, %v500_v62 }
 0x26b   : > { %v1115_v52 = vrot.slane %v3031_v43, %v514_v1  ;;  %v648_v61 = vmax.f32 %v644_v40, 0.0  ;;  %v1498_v17 = vrot.slane %v3031_v43, 1  ;;  %v1150_v18 = vrot.slane %v3031_v43, %v1149_v16 }
 0x26c   : > { %v653_v46 = vmul.f32 1.442695, %v652_v44  ;;  %1040 = vbcast.lane.b32.xlu0 %v1010_v45, 312  ;;  %v1589_v20 = vrot.slane %v3031_v43, 2  ;;  %v3084_v25 = vrot.slane %v3031_v43, %v1184_v21 }
 0x26e   : > { %2625 = vpow2.f32 %v653_v46  ;;  %1036 = vbcast.lane.b32.xlu1 %v1010_v45, 304 }
 0x270   : > { %1075 = vbcast.lane.b32.xlu0 %v1045_v47, 312 }
 0x272   : > { %1032 = vbcast.lane.b32.xlu1 %v1010_v45, 296 }
 0x274   : > { %1067 = vbcast.lane.b32.xlu0 %v1045_v47, 296 }
 0x276   : > { %1028 = vbcast.lane.b32.xlu1 %v1010_v45, 288 }
 0x278   : > { %1063 = vbcast.lane.b32.xlu0 %v1045_v47, 288 }
 0x27a   : > { %1024 = vbcast.lane.b32.xlu1 %v1010_v45, 280 }
 0x27b   : > { %v2626_v48 = vpop.eup %2625 }
 0x27c   : > { %v655_v49 = vadd.f32 1.0, %v2626_v48  ;;  %1055 = vbcast.lane.b32.xlu0 %v1045_v47, 272  ;;  %v658_v51 = vmul.f32 -0.5, %v2626_v48  ;;  %v661_v54 = vand.u32 2147483647, %v2626_v48 }
 0x27e   : > { %2627 = vlog2.f32 %v655_v49  ;;  %1020 = vbcast.lane.b32.xlu1 %v1010_v45, 272  ;;  %v659_v53 = vadd.f32 1.0, %v658_v51  ;;  %vm662_vm6 = vcmp.lt.f32.partialorder %v661_v54, 0.0004427343 }
 0x280   : > { %1110 = vbcast.lane.b32.xlu0 %v1080_v50, 312  ;;  %v660_v59 = vmul.f32 %v2626_v48, %v659_v53 }
 0x282   : > { %1016 = vbcast.lane.b32.xlu1 %v1010_v45, 264 }
 0x284   : > { %1106 = vbcast.lane.b32.xlu0 %v1080_v50, 304 }
 0x286   : > { %1012 = vbcast.lane.b32.xlu1 %v1010_v45, 256 }
 0x288   : > { %1145 = vbcast.lane.b32.xlu0 %v1115_v52, 312 }
 0x28a   : > { %1071 = vbcast.lane.b32.xlu1 %v1045_v47, 304 }
 0x28b   : > { %v2628_v57 = vpop.eup %2627 }
 0x28c   : > { %v657_v58 = vmul.f32 0.6931472, %v2628_v57  ;;  %1141 = vbcast.lane.b32.xlu0 %v1115_v52, 304 }
 0x28e   : > { %v663_v62 = vsel %vm662_vm6, %v660_v59, %v657_v58  ;;  %1059 = vbcast.lane.b32.xlu1 %v1045_v47, 280 }
 0x28f   : > { %v664_v2 = vadd.f32 %v663_v62, %v648_v61 }
 0x290   : > { %1137 = vbcast.lane.b32.xlu0 %v1115_v52, 296 }
 0x291   : > { %v665_v3 = vsel %vm649_vm7, %v644_v40, %v664_v2 }
 0x292   : > { %v3049_v1 = vmul.f32 %v665_v3, %v3024_v35  ;;  %v676_v4 = vcombine.high %v665_v3, %v665_v3  ;;  %1051 = vbcast.lane.b32.xlu1 %v1045_v47, 264  ;;  %v683_v46 = vrot.slane %v665_v3, %v3052_v5 }
 0x294   : > { %v690_v6 = vrot.slane %v676_v4, %v3052_v5  ;;  %v958_v8 = vcombine.high %v3049_v1, %v3049_v1  ;;  %1090 = vbcast.lane.b32.xlu0 %v1080_v50, 272  ;;  %v699_v55 = vrot.slane %v683_v46, %v3052_v5 }
 0x296   : > { %v692_v9 = vcombine.high %v690_v6, %v690_v6  ;;  %v706_v10 = vrot.slane %v690_v6, %v3052_v5  ;;  %1047 = vbcast.lane.b32.xlu1 %v1045_v47, 256  ;;  %v972_v11 = vrot.slane %v958_v8, %v3052_v5  ;;  %v3149_v47 = vld [vmem:[%s3850_s7 + $0x18] sm:$0xff]  ;;  %v3192_v63 = vrot.slane %v699_v55, %v3009_v0 }
 0x297   : > { %v1219_v8 = vsub.s32 6, %v3001_v60 }
 0x298   : > { %v720_v12 = vrot.slane %v692_v9, %v3052_v5  ;;  %1086 = vbcast.lane.b32.xlu0 %v1080_v50, 264  ;;  %v974_v13 = vcombine.high %v972_v11, %v972_v11  ;;  %v3061_v14 = vrot.slane %v972_v11, %v3052_v5  ;;  %v744_v19 = vrot.slane %v706_v10, %v3009_v0 }
 0x299   : > { %v722_v29 = vcombine.high %v706_v10, %v706_v10  ;;  %v772_v11 = vmul.f32 %v3192_v63, %v3098_v28  ;;  %v3234_v21 = vrot.slane %v3031_v43, %v1219_v8  ;;  %v769_v8 = vmul.f32 %v3192_v63, %v3089_v26 }
 0x29a   : > { %1102 = vbcast.lane.b32.xlu1 %v1080_v50, 296  ;;  %v3064_v15 = vrot.slane %v974_v13, %v3052_v5  ;;  %v748_v23 = vrot.slane %v720_v12, %v3009_v0  ;;  %v3081_v24 = vmul.f32 %v744_v19, %v3077_v22  ;;  %v3092_v27 = vmul.f32 %v744_v19, %v3089_v26 }
 0x29b   : > { %v3104_v31 = vmul.f32 %v744_v19, %v3098_v28  ;;  %v724_v36 = vcombine.high %v720_v12, %v720_v12  ;;  %v3127_v38 = vmul.f32 %v744_v19, %v3114_v33  ;;  %v3130_v39 = vmul.f32 %v744_v19, %v3109_v32 }
 0x29c   : > { %3859 = vst [vmem:[#allocation3_spill] sm:$0xff] %v3064_v15  ;;  %1082 = vbcast.lane.b32.xlu0 %v1080_v50, 256  ;;  %v3101_v30 = vmul.f32 %v748_v23, %v3077_v22  ;;  %v3133_v40 = vmul.f32 %v744_v19, %v3119_v34  ;;  %v752_v41 = vrot.slane %v722_v29, %v3009_v0  ;;  %v1680_v13 = vrot.slane %v3031_v43, 3 }
 0x29d   : > { %v3137_v42 = vmul.f32 %v748_v23, %v3098_v28  ;;  %v3140_v44 = vmul.f32 %v744_v19, %v3124_v37  ;;  %v3143_v45 = vmul.f32 %v748_v23, %v3109_v32  ;;  %v3152_v48 = vmul.f32 %v748_v23, %v3119_v34 }
 0x29e   : > { %1098 = vbcast.lane.b32.xlu1 %v1080_v50, 288  ;;  %v756_v49 = vrot.slane %v724_v36, %v3009_v0  ;;  %v3159_v51 = vmul.f32 %v748_v23, %v3124_v37  ;;  %v3166_v53 = vmul.f32 %v748_v23, %v3089_v26  ;;  %v3169_v54 = vmul.f32 %v752_v41, %v3089_v26 }
 0x29f   : > { %v3173_v56 = vmul.f32 %v748_v23, %v3149_v47  ;;  %v3176_v57 = vmul.f32 %v748_v23, %v3114_v33  ;;  %v3182_v59 = vmul.f32 %v752_v41, %v3098_v28  ;;  %v3186_v61 = vmul.f32 %v752_v41, %v3114_v33 }
 0x2a0   : > { %1121 = vbcast.lane.b32.xlu0 %v1115_v52, 264  ;;  %3860 = vst [vmem:[#allocation4_spill] sm:$0xff] %v3159_v51  ;;  %3861 = vst [vmem:[#allocation5_spill] sm:$0xff] %v3169_v54  ;;  %v3179_v58 = vmul.f32 %v756_v49, %v3077_v22  ;;  %v3189_v62 = vmul.f32 %v752_v41, %v3109_v32  ;;  %v3196_v2 = vmul.f32 %v752_v41, %v3119_v34 }
 0x2a1   : > { %3862 = vst [vmem:[#allocation6_spill] sm:$0xff] %v3173_v56  ;;  %3864 = vst [vmem:[#allocation8_spill] sm:$0xff] %v3186_v61  ;;  %v3199_v3 = vmul.f32 %v756_v49, %v3098_v28  ;;  %v3202_v4 = vmul.f32 %v752_v41, %v3124_v37  ;;  %v3205_v6 = vmul.f32 %v756_v49, %v3109_v32  ;;  %v843_v23 = vmul.f32 1.442695, %v772_v11 }
 0x2a2   : > { %1094 = vbcast.lane.b32.xlu1 %v1080_v50, 280  ;;  %v3156_v50 = vmul.f32 %v744_v19, %v3149_v47  ;;  %3863 = vst [vmem:[#allocation7_spill] sm:$0xff] %v3179_v58  ;;  %3865 = vst [vmem:[#allocation9_spill] sm:$0xff] %v3189_v62  ;;  %v3209_v9 = vmul.f32 %v756_v49, %v3119_v34  ;;  %v3212_v10 = vmul.f32 %v752_v41, %v3149_v47 }
 0x2a3   : > { %3866 = vst [vmem:[#allocation10_spill] sm:$0xff] %v3196_v2  ;;  %3867 = vst [vmem:[#allocation11_spill] sm:$0xff] %v3199_v3  ;;  %v691_v12 = vcombine.high %v683_v46, %v683_v46  ;;  %v3219_v16 = vmul.f32 %v756_v49, %v3089_v26  ;;  %v3227_v19 = vmul.f32 %v756_v49, %v3114_v33  ;;  %2629 = vpow2.f32 %v843_v23 }
 0x2a4   : > { %1117 = vbcast.lane.b32.xlu0 %v1115_v52, 256  ;;  %3868 = vst [vmem:[#allocation12_spill] sm:$0xff] %v3202_v4  ;;  %3869 = vst [vmem:[#allocation13_spill] sm:$0xff] %v3205_v6  ;;  %v1771_v11 = vrot.slane %v3031_v43, 4  ;;  %v965_v23 = vrot.slane %v3049_v1, %v3052_v5  ;;  %v765_v3 = vmul.f32 %v3192_v63, %v3124_v37  ;;  %v1862_v4 = vrot.slane %v3031_v43, 5 }
 0x2a5   : > { %3870 = vst [vmem:[#allocation14_spill] sm:$0xff] %v3209_v9  ;;  %3871 = vst [vmem:[#allocation15_spill] sm:$0xff] %v3212_v10  ;;  %v3237_v29 = vrot.slane %v691_v12, %v3052_v5  ;;  %v1254_v12 = vsub.s32 7, %v3001_v60 }
 0x2a6   : > { %1499 = vrot.lane.b32.xlu1 %v1498_v17, %s2771_s27  ;;  %3872 = vst [vmem:[#allocation16_spill] sm:$0xff] %v3219_v16  ;;  %v771_v17 = vmul.f32 %v3192_v63, %v3109_v32  ;;  %3874 = vst [vmem:[#allocation18_spill] sm:$0xff] %v3227_v19 }
 0x2a7   : > { %v3245_v46 = vrot.slane %v3237_v29, %v3009_v0  ;;  %v3262_v7 = vrot.slane %v3031_v43, %v1254_v12 }
 0x2a8   : > { %1172 = vbcast.lane.b32.xlu0 %v1150_v18, 296  ;;  %v841_v36 = vmul.f32 1.442695, %v771_v17 }
 0x2a9   : > { %v780_v17 = vmul.f32 %v3245_v46, %v3098_v28 }
 0x2aa   : > { %1133 = vbcast.lane.b32.xlu1 %v1115_v52, 288  ;;  %2631 = vpow2.f32 %v841_v36  ;;  %v837_v36 = vmul.f32 1.442695, %v769_v8 }
 0x2ac   : > { %1168 = vbcast.lane.b32.xlu0 %v1150_v18, 288 }
 0x2ae   : > { %1129 = vbcast.lane.b32.xlu1 %v1115_v52, 280 }
 0x2b0   : > { %1590 = vrot.lane.b32.xlu0 %v1589_v20, %s2771_s27  ;;  %v3230_v20 = vmul.f32 %v756_v49, %v3124_v37 }
 0x2b2   : > { %1125 = vbcast.lane.b32.xlu1 %v1115_v52, 272  ;;  %v3162_v52 = vmul.f32 %v752_v41, %v3077_v22  ;;  %3875 = vst [vmem:[#allocation19_spill] sm:$0xff] %v3230_v20  ;;  %v770_v41 = vmul.f32 %v3192_v63, %v3077_v22 }
 0x2b4   : > { %1207 = vbcast.lane.b32.xlu0 %v3084_v25, 296 }
 0x2b6   : > { %1180 = vbcast.lane.b32.xlu1 %v1150_v18, 312 }
 0x2b8   : > { %1160 = vbcast.lane.b32.xlu0 %v1150_v18, 272 }
 0x2ba   : > { %1176 = vbcast.lane.b32.xlu1 %v1150_v18, 304 }
 0x2bc   : > { %1156 = vbcast.lane.b32.xlu0 %v1150_v18, 264 }
 0x2be   : > { %1215 = vbcast.lane.b32.xlu1 %v3084_v25, 312 }
 0x2c0   : > { %1152 = vbcast.lane.b32.xlu0 %v1150_v18, 256 }
 0x2c2   : > { %1211 = vbcast.lane.b32.xlu1 %v3084_v25, 304 }
 0x2c4   : > { %1191 = vbcast.lane.b32.xlu0 %v3084_v25, 264 }
 0x2c6   : > { %1164 = vbcast.lane.b32.xlu1 %v1150_v18, 280  ;;  %v3224_v18 = vmul.f32 %v756_v49, %v3149_v47  ;;  %v839_v49 = vmul.f32 1.442695, %v770_v41  ;;  %v768_v41 = vmul.f32 %v3192_v63, %v3149_v47 }
 0x2c8   : > { %1187 = vbcast.lane.b32.xlu0 %v3084_v25, 256  ;;  %3873 = vst [vmem:[#allocation17_spill] sm:$0xff] %v3224_v18  ;;  %2633 = vpow2.f32 %v839_v49  ;;  %v835_v1 = vmul.f32 1.442695, %v768_v41  ;;  %v767_v49 = vmul.f32 %v3192_v63, %v3114_v33 }
 0x2c9   : > { %2635 = vpow2.f32 %v837_v36 }
 0x2ca   : > { %1681 = vrot.lane.b32.xlu1 %v1680_v13, %s2771_s27  ;;  %v721_v13 = vcombine.high %v699_v55, %v699_v55  ;;  %v859_v55 = vmul.f32 1.442695, %v780_v17  ;;  %v833_v36 = vmul.f32 1.442695, %v767_v49 }
 0x2cc   : > { %1242 = vbcast.lane.b32.xlu0 %v3234_v21, 296  ;;  %v3265_v60 = vrot.slane %v721_v13, %v3009_v0  ;;  %2637 = vpow2.f32 %v859_v55  ;;  %v766_v13 = vmul.f32 %v3192_v63, %v3119_v34  ;;  %v973_v55 = vcombine.high %v965_v23, %v965_v23 }
 0x2cd   : > { %2639 = vpow2.f32 %v835_v1 }
 0x2ce   : > { %1203 = vbcast.lane.b32.xlu1 %v3084_v25, 288  ;;  %v788_v12 = vmul.f32 %v3265_v60, %v3098_v28  ;;  %v831_v19 = vmul.f32 1.442695, %v766_v13  ;;  %2641 = vpow2.f32 %v833_v36  ;;  %v779_v36 = vmul.f32 %v3245_v46, %v3109_v32 }
 0x2d0   : > { %1238 = vbcast.lane.b32.xlu0 %v3234_v21, 288  ;;  %v875_v6 = vmul.f32 1.442695, %v788_v12  ;;  %v3876_v12 = vmov 0.0  }
 0x2d2   : > { %1199 = vbcast.lane.b32.xlu1 %v3084_v25, 280  ;;  %2643 = vpow2.f32 %v875_v6  ;;  %v778_v6 = vmul.f32 %v3245_v46, %v3077_v22 }
 0x2d3   : > { %2645 = vpow2.f32 %v831_v19 }
 0x2d4   : > { %1772 = vrot.lane.b32.xlu0 %v1771_v11, %s2771_s27  ;;  %v3269_v11 = vrot.slane %v965_v23, %v3052_v5  ;;  %v3295_v23 = vrot.slane %v973_v55, %v3052_v5  ;;  %v855_v58 = vmul.f32 1.442695, %v778_v6  ;;  %v776_v6 = vmul.f32 %v3245_v46, %v3149_v47 }
 0x2d6   : > { %1195 = vbcast.lane.b32.xlu1 %v3084_v25, 272  ;;  %v2630_v25 = vpop.eup %2629  ;;  %v3283_v17 = vrot.slane %v3269_v11, %v3009_v0  ;;  %v1003_v56 = vcombine.high %v3269_v11, %v3269_v11 }
 0x2d7   : > { %v2632_v41 = vpop.eup %2631  ;;  %v1398_v20 = vmul.f32 0.0, %v2630_v25 }
 0x2d8   : > { %1277 = vbcast.lane.b32.xlu0 %v3262_v7, 296  ;;  %v1397_v49 = vmul.f32 0.0, %v2632_v41  ;;  %v2634_v16 = vpop.eup %2633 }
 0x2da   : > { %1250 = vbcast.lane.b32.xlu1 %v3234_v21, 312 }
 0x2dc   : > { %v3274_v8 = vpop.permute.xlu1 %1408  ;;  %1230 = vbcast.lane.b32.xlu0 %v3234_v21, 272 }
 0x2de   : > { %1246 = vbcast.lane.b32.xlu1 %v3234_v21, 304  ;;  %v1041_v35 = vpop.permute.xlu0 %1040 }
 0x2df   : > { %v1334_v18 = vmul.f32 %v3283_v17, %v1041_v35 }
 0x2e0   : > { %v1037_v9 = vpop.permute.xlu1 %1036  ;;  %1226 = vbcast.lane.b32.xlu0 %v3234_v21, 264 }
 0x2e1   : > { %v1406_v61 = vadd.f32 %v1398_v20, %v1334_v18  ;;  %v1333_v1 = vmul.f32 %v3283_v17, %v1037_v9  ;;  %v1396_v9 = vmul.f32 0.0, %v2634_v16  ;;  %v829_v18 = vmul.f32 1.442695, %v765_v3  ;;  %v2636_v20 = vpop.eup %2635 }
 0x2e2   : > { %1285 = vbcast.lane.b32.xlu1 %v3262_v7, 312  ;;  %v1076_v10 = vpop.permute.xlu0 %1075  ;;  %v2638_v19 = vpop.eup %2637  ;;  %v3314_v3 = vrot.slane %v3295_v23, %v3009_v0  ;;  %v1395_v55 = vmul.f32 0.0, %v2636_v20 }
 0x2e3   : > { %v3292_v35 = vadd.f32 %v1397_v49, %v1333_v1  ;;  %2421 = vmatpush3.msra.mxu0 %v1406_v61  ;;  %2647 = vpow2.f32 %v829_v18  ;;  %v2640_v1 = vpop.eup %2639  ;;  %v857_v18 = vmul.f32 1.442695, %v779_v36 }
 0x2e4   : > { %v1033_v25 = vpop.permute.xlu1 %1032  ;;  %1222 = vbcast.lane.b32.xlu0 %v3234_v21, 256  ;;  %2422 = vmatprep.subr.mxu0 %v3876_v12  ;;  %v1342_v20 = vmul.f32 %v3314_v3, %v1076_v10  ;;  %v1394_v62 = vmul.f32 0.0, %v2640_v1  ;;  %v2642_v10 = vpop.eup %2641 }
 0x2e5   : > { %v1332_v63 = vmul.f32 %v3283_v17, %v1033_v25  ;;  %2423 = vmatpush3.msra.mxu0 %v3292_v35  ;;  %v777_v25 = vmul.f32 %v3245_v46, %v3089_v26  ;;  %2649 = vpow2.f32 %v857_v18  ;;  %v1393_v51 = vmul.f32 0.0, %v2642_v10 }
 0x2e6   : > { %1281 = vbcast.lane.b32.xlu1 %v3262_v7, 304  ;;  %v3302_v13 = vpop.permute.xlu0 %1067  ;;  %2424 = vmatprep.subr.mxu0 %v3876_v12  ;;  %2651 = vpow2.f32 %v855_v58  ;;  %v774_v58 = vmul.f32 %v3245_v46, %v3119_v34  ;;  %v723_v18 = vcombine.high %v3237_v29, %v3237_v29 }
 0x2e7   : > { %v3305_v5 = vadd.f32 %v1396_v9, %v1332_v63  ;;  %v1953_v63 = vrot.slane %v3031_v43, 6  ;;  %v787_v9 = vmul.f32 %v3265_v60, %v3109_v32 }
 0x2e8   : > { %v1029_v16 = vpop.permute.xlu1 %1028  ;;  %1261 = vbcast.lane.b32.xlu0 %v3262_v7, 264 }
 0x2e9   : > { %v1331_v41 = vmul.f32 %v3283_v17, %v1029_v16  ;;  %2425 = vmatpush3.msra.mxu0 %v3305_v5  ;;  %v1489_v16 = vmul.f32 %v2638_v19, %v1406_v61  ;;  %v775_v61 = vmul.f32 %v3245_v46, %v3114_v33  ;;  %v853_v19 = vmul.f32 1.442695, %v777_v25 }
 0x2ea   : > { %1234 = vbcast.lane.b32.xlu1 %v3234_v21, 280  ;;  %v3319_v49 = vpop.permute.xlu0 %1063  ;;  %2426 = vmatprep.subr.mxu0 %v3876_v12  ;;  %v3349_v25 = vrot.slane %v1003_v56, %v3009_v0  ;;  %v773_v56 = vmul.f32 %v3245_v46, %v3124_v37 }
 0x2eb   : > { %v3328_v54 = vadd.f32 %v1395_v55, %v1331_v41  ;;  %v3344_v11 = vadd.f32 %v1489_v16, %v1342_v20  ;;  %v873_v55 = vmul.f32 1.442695, %v787_v9  ;;  %2653 = vpow2.f32 %v853_v19 }
 0x2ec   : > { %v1025_v21 = vpop.permute.xlu1 %1024  ;;  %1954 = vrot.lane.b32.xlu0 %v1953_v63, %s2771_s27  ;;  %v2644_v63 = vpop.eup %2643  ;;  %v845_v29 = vmul.f32 1.442695, %v773_v56 }
 0x2ed   : > { %v1330_v2 = vmul.f32 %v3283_v17, %v1025_v21  ;;  %2427 = vmatpush3.msra.mxu0 %v3328_v54  ;;  %v2646_v15 = vpop.eup %2645  ;;  %v1580_v16 = vmul.f32 %v2644_v63, %v3344_v11  ;;  %2655 = vpow2.f32 %v873_v55  ;;  %v847_v55 = vmul.f32 1.442695, %v774_v58 }
 0x2ee   : > { %1863 = vrot.lane.b32.xlu1 %v1862_v4, %s2771_s27  ;;  %v3339_v36 = vpop.permute.xlu0 %1055  ;;  %2428 = vmatprep.subr.mxu0 %v3876_v12  ;;  %v849_v4 = vmul.f32 1.442695, %v775_v61  ;;  %v786_v63 = vmul.f32 %v3265_v60, %v3077_v22 }
 0x2ef   : > { %v3346_v41 = vadd.f32 %v1394_v62, %v1330_v2  ;;  %v851_v2 = vmul.f32 1.442695, %v776_v6  ;;  %v1392_v6 = vmul.f32 0.0, %v2646_v15  ;;  %v3378_v15 = vrot.slane %v723_v18, %v3009_v0 }
 0x2f0   : > { %v1021_v1 = vpop.permute.xlu1 %1020  ;;  %2657 = vpow2.f32 %v849_v4  ;;  %v2648_v46 = vpop.eup %2647  ;;  %v871_v56 = vmul.f32 1.442695, %v786_v63  ;;  %v2044_v63 = vrot.slane %v3031_v43, 7 }
 0x2f1   : > { %v1329_v21 = vmul.f32 %v3283_v17, %v1021_v1  ;;  %2429 = vmatpush3.msra.mxu0 %v3346_v41  ;;  %2659 = vpow2.f32 %v851_v2  ;;  %v795_v43 = vmul.f32 %v3378_v15, %v3109_v32  ;;  %v1339_v32 = vmul.f32 %v3314_v3, %v3319_v49 }
 0x2f2   : > { %1273 = vbcast.lane.b32.xlu1 %v3262_v7, 288  ;;  %v1111_v62 = vpop.permute.xlu0 %1110  ;;  %2430 = vmatprep.subr.mxu0 %v3876_v12  ;;  %2661 = vpow2.f32 %v847_v55  ;;  %v796_v55 = vmul.f32 %v3378_v15, %v3098_v28  ;;  %v1340_v28 = vmul.f32 %v3314_v3, %v3302_v13 }
 0x2f3   : > { %v3359_v9 = vadd.f32 %v1393_v51, %v1329_v21  ;;  %v1350_v20 = vmul.f32 %v3349_v25, %v1111_v62  ;;  %v1391_v62 = vmul.f32 0.0, %v2648_v46  ;;  %2663 = vpow2.f32 %v845_v29 }
 0x2f4   : > { %v1017_v61 = vpop.permute.xlu1 %1016  ;;  %2665 = vpow2.f32 %v871_v56 }
 0x2f5   : > { %v3365_v10 = vadd.f32 %v1580_v16, %v1350_v20  ;;  %v1328_v19 = vmul.f32 %v3283_v17, %v1017_v61  ;;  %2431 = vmatpush3.msra.mxu0 %v3359_v9  ;;  %v785_v20 = vmul.f32 %v3265_v60, %v3089_v26  ;;  %v2650_v16 = vpop.eup %2649 }
 0x2f6   : > { %1269 = vbcast.lane.b32.xlu1 %v3262_v7, 280  ;;  %v1107_v51 = vpop.permute.xlu0 %1106  ;;  %2432 = vmatprep.subr.mxu0 %v3876_v12 }
 0x2f7   : > { %v3371_v1 = vadd.f32 %v1392_v6, %v1328_v19  ;;  %2459 = vmatpush3.msra.mxu1 %v3365_v10  ;;  %v1488_v19 = vmul.f32 %v2650_v16, %v3292_v35  ;;  %v794_v6 = vmul.f32 %v3378_v15, %v3077_v22  ;;  %v869_v22 = vmul.f32 1.442695, %v785_v20 }
 0x2f8   : > { %v1013_v4 = vpop.permute.xlu1 %1012  ;;  %2460 = vmatprep.subr.mxu1 %v3876_v12  ;;  %v1349_v56 = vmul.f32 %v3349_v25, %v1107_v51  ;;  %v782_v16 = vmul.f32 %v3265_v60, %v3119_v34 }
 0x2f9   : > { %v1327_v21 = vmul.f32 %v3283_v17, %v1013_v4  ;;  %2433 = vmatpush3.msra.mxu0 %v3371_v1  ;;  %v2652_v17 = vpop.eup %2651  ;;  %v887_v13 = vmul.f32 1.442695, %v794_v6  ;;  %v781_v6 = vmul.f32 %v3265_v60, %v3124_v37  ;;  %2667 = vpow2.f32 %v869_v22 }
 0x2fa   : > { %1265 = vbcast.lane.b32.xlu1 %v3262_v7, 272  ;;  %v3383_v2 = vpop.permute.xlu0 %1145  ;;  %2434 = vmatprep.subr.mxu0 %v3876_v12  ;;  %v1487_v46 = vmul.f32 %v2652_v17, %v3305_v5  ;;  %v2654_v35 = vpop.eup %2653  ;;  %v784_v5 = vmul.f32 %v3265_v60, %v3149_v47 }
 0x2fb   : > { %v3386_v58 = vadd.f32 %v1391_v62, %v1327_v21  ;;  %v783_v62 = vmul.f32 %v3265_v60, %v3114_v33  ;;  %2669 = vpow2.f32 %v887_v13  ;;  %v1337_v60 = vmul.f32 %v3314_v3, %v3339_v36 }
 0x2fc   : > { %v1072_v18 = vpop.permute.xlu1 %1071  ;;  %v793_v36 = vmul.f32 %v3378_v15, %v3089_v26  ;;  %v903_v26 = vmul.f32 1.442695, %v3081_v24 }
 0x2fd   : > { %v1341_v61 = vmul.f32 %v3314_v3, %v1072_v18  ;;  %2435 = vmatpush3.msra.mxu0 %v3386_v58 }
 0x2fe   : > { %1257 = vbcast.lane.b32.xlu1 %v3262_v7, 256  ;;  %v3399_v29 = vpop.permute.xlu0 %1141  ;;  %2437 = vmatmul.mubr.msk.f32.vlgmr.msra.gmra.mxu0 %vm357_vm0, %v3274_v8  ;;  %v2656_v7 = vpop.eup %2655  ;;  %v1486_v8 = vmul.f32 %v2654_v35, %v3328_v54  ;;  %v3421_v54 = vadd.f32 %v1487_v46, %v1340_v28  ;;  %v867_v46 = vmul.f32 1.442695, %v784_v5  ;;  %v863_v28 = vmul.f32 1.442695, %v782_v16 }
 0x2ff   : > { %v1496_v4 = vadd.f32 %v1488_v19, %v1341_v61  ;;  %2439 = vmatprep.subr.mxu0 %v3876_v12  ;;  %2455 = vmatprep.mubr.msk.f32.mxu0 %vm2772_vm5, %v3876_v12  ;;  %v2658_v18 = vpop.eup %2657 }
 0x300   : > { %2440 = vmatpush3.msra.mxu0 %v3344_v11  ;;  %v1060_v21 = vpop.permute.xlu1 %1059  ;;  %v891_v11 = vmul.f32 1.442695, %v796_v55  ;;  %v2660_v61 = vpop.eup %2659  ;;  %v3434_v35 = vadd.f32 %v1486_v8, %v1339_v32  ;;  %v1484_v49 = vmul.f32 %v2658_v18, %v3359_v9  ;;  %v889_v55 = vmul.f32 1.442695, %v795_v43 }
 0x301   : > { %v1579_v20 = vmul.f32 %v2656_v7, %v1496_v4  ;;  %2441 = vmatprep.subr.mxu0 %v3876_v12  ;;  %v1338_v17 = vmul.f32 %v3314_v3, %v1060_v21  ;;  %v865_v7 = vmul.f32 1.442695, %v783_v62  ;;  %v2662_v5 = vpop.eup %2661  ;;  %v861_v8 = vmul.f32 1.442695, %v781_v6 }
 0x302   : > { %2442 = vmatpush3.msra.mxu0 %v1496_v4  ;;  %2045 = vrot.lane.b32.xlu1 %v2044_v63, %s2771_s27  ;;  %v3427_v51 = vpop.permute.xlu0 %1137  ;;  %v1485_v4 = vmul.f32 %v2660_v61, %v3346_v41  ;;  %2671 = vpow2.f32 %v891_v11  ;;  %v2664_v43 = vpop.eup %2663  ;;  %v1483_v21 = vmul.f32 %v2662_v5, %v3371_v1  ;;  %v3454_v62 = vadd.f32 %v1484_v49, %v1337_v60 }
 0x303   : > { %v3429_v19 = vadd.f32 %v1579_v20, %v1349_v56  ;;  %2443 = vmatprep.subr.mxu0 %v3876_v12  ;;  %2673 = vpow2.f32 %v867_v46  ;;  %v790_v20 = vmul.f32 %v3378_v15, %v3119_v34  ;;  %v1482_v13 = vmul.f32 %v2664_v43, %v3386_v58  ;;  %v2666_v58 = vpop.eup %2665 }
 0x304   : > { %2444 = vmatpush3.msra.mxu0 %v3421_v54  ;;  %v1052_v63 = vpop.permute.xlu1 %1051  ;;  %v3443_v22 = vadd.f32 %v1485_v4, %v1338_v17  ;;  %2675 = vpow2.f32 %v889_v55  ;;  %v885_v34 = vmul.f32 1.442695, %v793_v36  ;;  %v791_v17 = vmul.f32 %v3378_v15, %v3114_v33 }
 0x305   : > { %2445 = vmatprep.subr.mxu0 %v3876_v12  ;;  %2461 = vmatpush3.msra.mxu1 %v3429_v19  ;;  %v1336_v9 = vmul.f32 %v3314_v3, %v1052_v63  ;;  %2677 = vpow2.f32 %v865_v7  ;;  %v879_v24 = vmul.f32 1.442695, %v790_v20  ;;  %v1578_v6 = vmul.f32 %v2666_v58, %v3421_v54 }
 0x306   : > { %2446 = vmatpush3.msra.mxu0 %v3434_v35  ;;  %v3447_v41 = vpop.permute.xlu0 %1090  ;;  %2462 = vmatprep.subr.mxu1 %v3876_v12  ;;  %2679 = vpow2.f32 %v863_v28  ;;  %v919_v46 = vmul.f32 1.442695, %v3101_v30  ;;  %v901_v55 = vmul.f32 1.442695, %v3092_v27  ;;  %v789_v33 = vmul.f32 %v3378_v15, %v3124_v37  ;;  %v2668_v63 = vpop.eup %2667 }
 0x307   : > { %2447 = vmatprep.subr.mxu0 %v3876_v12  ;;  %v3463_v18 = vadd.f32 %v1483_v21, %v1336_v9  ;;  %2681 = vpow2.f32 %v861_v8  ;;  %v881_v30 = vmul.f32 1.442695, %v791_v17  ;;  %v3494_v37 = vrot.slane %v3061_v14, %v3009_v0 }
 0x308   : > { %2448 = vmatpush3.msra.mxu0 %v3443_v22  ;;  %v1048_v56 = vpop.permute.xlu1 %1047  ;;  %2683 = vpow2.f32 %v903_v26  ;;  %v2670_v9 = vpop.eup %2669  ;;  %v917_v5 = vmul.f32 1.442695, %v3166_v53  ;;  %v877_v36 = vmul.f32 1.442695, %v789_v33  ;;  %v907_v20 = vmul.f32 1.442695, %v3104_v31 }
 0x309   : > { %v1335_v16 = vmul.f32 %v3314_v3, %v1048_v56  ;;  %2449 = vmatprep.subr.mxu0 %v3876_v12  ;;  %v792_v3 = vmul.f32 %v3378_v15, %v3149_v47  ;;  %v1005_v47 = vcombine.high %v3295_v23, %v3295_v23  ;;  %2685 = vpow2.f32 %v885_v34 }
 0x30a   : > { %2450 = vmatpush3.msra.mxu0 %v3454_v62  ;;  %v3466_v1 = vpop.permute.xlu0 %1086  ;;  %2687 = vpow2.f32 %v879_v24  ;;  %v1577_v23 = vmul.f32 %v2668_v63, %v3434_v35  ;;  %v1345_v26 = vmul.f32 %v3349_v25, %v3447_v41 }
 0x30b   : > { %v3468_v32 = vadd.f32 %v1482_v13, %v1335_v16  ;;  %2451 = vmatprep.subr.mxu0 %v3876_v12  ;;  %v883_v54 = vmul.f32 1.442695, %v792_v3  ;;  %2689 = vpow2.f32 %v919_v46  ;;  %v3490_v27 = vrot.slane %v1005_v47, %v3009_v0 }
 0x30c   : > { %2452 = vmatpush3.msra.mxu0 %v3463_v18  ;;  %v1103_v11 = vpop.permute.xlu1 %1102  ;;  %2691 = vpow2.f32 %v901_v55  ;;  %v897_v16 = vmul.f32 1.442695, %v3127_v38  ;;  %v905_v38 = vmul.f32 1.442695, %v3130_v39  ;;  %v1344_v41 = vmul.f32 %v3349_v25, %v3466_v1 }
 0x30d   : > { %v1348_v61 = vmul.f32 %v3349_v25, %v1103_v11  ;;  %2453 = vmatprep.subr.mxu0 %v3876_v12  ;;  %2693 = vpow2.f32 %v883_v54  ;;  %v1358_v21 = vmul.f32 %v3490_v27, %v3383_v2  ;;  %v1356_v53 = vmul.f32 %v3490_v27, %v3427_v51 }
 0x30e   : > { %2454 = vmatpush3.msra.mxu0 %v3468_v32  ;;  %v1083_v49 = vpop.permute.xlu0 %1082  ;;  %2695 = vpow2.f32 %v881_v30  ;;  %v895_v39 = vmul.f32 1.442695, %v3133_v40  ;;  %v935_v1 = vmul.f32 1.442695, %v3162_v52 }
 0x30f   : > { %v1586_v4 = vadd.f32 %v1578_v6, %v1348_v61  ;;  %2477 = vmatprep.subr.mxu0 %v3876_v12  ;;  %v2672_v28 = vpop.eup %2671  ;;  %2697 = vpow2.f32 %v917_v5 }
 0x310   : > { %v1099_v7 = vpop.permute.xlu1 %1098  ;;  %v2674_v43 = vpop.eup %2673  ;;  %v1671_v58 = vmul.f32 %v2672_v28, %v3365_v10  ;;  %v1357_v10 = vmul.f32 %v3490_v27, %v3399_v29  ;;  %2699 = vpow2.f32 %v877_v36  ;;  %v923_v29 = vmul.f32 1.442695, %v3137_v42 }
 0x311   : > { %v1347_v60 = vmul.f32 %v3349_v25, %v1099_v7  ;;  %2463 = vmatpush3.msra.mxu1 %v1586_v4  ;;  %v1669_v8 = vmul.f32 %v2670_v9, %v1586_v4  ;;  %v2676_v13 = vpop.eup %2675  ;;  %v1576_v3 = vmul.f32 %v2674_v43, %v3443_v22  ;;  %2701 = vpow2.f32 %v907_v20 }
 0x312   : > { %v3496_v15 = vpop.permute.xlu0 %1121  ;;  %2464 = vmatprep.subr.mxu1 %v3876_v12  ;;  %v2678_v2 = vpop.eup %2677  ;;  %v1670_v31 = vmul.f32 %v2676_v13, %v3429_v19  ;;  %v3524_v61 = vadd.f32 %v1671_v58, %v1358_v21  ;;  %v1343_v19 = vmul.f32 %v3349_v25, %v1083_v49  ;;  %2703 = vpow2.f32 %v897_v16 }
 0x313   : > { %v3500_v35 = vadd.f32 %v1577_v23, %v1347_v60  ;;  %v1575_v51 = vmul.f32 %v2678_v2, %v3454_v62  ;;  %v1677_v24 = vadd.f32 %v1669_v8, %v1356_v53  ;;  %v2680_v17 = vpop.eup %2679  ;;  %2705 = vpow2.f32 %v905_v38  ;;  %v3877_v2 = vld [vmem:[#allocation3_spill] sm:$0xff]  ;;  %v3878_v38 = vld [vmem:[#allocation4_spill] sm:$0xff] }
 0x314   : > { %v1095_v56 = vpop.permute.xlu1 %1094  ;;  %v2682_v46 = vpop.eup %2681  ;;  %v1574_v62 = vmul.f32 %v2680_v17, %v3463_v18  ;;  %v3536_v4 = vadd.f32 %v1670_v31, %v1357_v10  ;;  %v913_v42 = vmul.f32 1.442695, %v3176_v57  ;;  %2707 = vpow2.f32 %v935_v1 }
 0x315   : > { %v1346_v34 = vmul.f32 %v3349_v25, %v1095_v56  ;;  %2465 = vmatpush3.msra.mxu1 %v3500_v35  ;;  %v3530_v47 = vadd.f32 %v1575_v51, %v1345_v26  ;;  %v2684_v55 = vpop.eup %2683  ;;  %v1573_v25 = vmul.f32 %v2682_v46, %v3468_v32  ;;  %2709 = vpow2.f32 %v895_v39 }
 0x316   : > { %v3515_v11 = vpop.permute.xlu0 %1117  ;;  %2466 = vmatprep.subr.mxu1 %v3876_v12  ;;  %v3542_v18 = vadd.f32 %v1574_v62, %v1344_v41  ;;  %v1760_v33 = vmul.f32 %v2684_v55, %v1677_v24  ;;  %v2686_v52 = vpop.eup %2685  ;;  %v893_v57 = vmul.f32 1.442695, %v3140_v44  ;;  %2711 = vpow2.f32 %v923_v29 }
 0x317   : > { %v3522_v22 = vadd.f32 %v1576_v3, %v1346_v34  ;;  %v3547_v32 = vadd.f32 %v1573_v25, %v1343_v19  ;;  %v2688_v63 = vpop.eup %2687  ;;  %v1668_v60 = vmul.f32 %v2686_v52, %v3500_v35  ;;  %v921_v35 = vmul.f32 1.442695, %v3143_v45  ;;  %v3879_v19 = vld [vmem:[#allocation9_spill] sm:$0xff]  ;;  %v3880_v25 = vld [vmem:[#allocation10_spill] sm:$0xff] }
 0x318   : > { %v1500_v6 = vpop.permute.xlu1 %1499  ;;  %v2690_v23 = vpop.eup %2689  ;;  %v911_v21 = vmul.f32 1.442695, %v3152_v48  ;;  %2713 = vpow2.f32 %v913_v42  ;;  %v899_v53 = vmul.f32 1.442695, %v3156_v50  ;;  %v939_v3 = vmul.f32 1.442695, %v3182_v59 }
 0x319   : > { %2456 = vmatmul.mubr.msk.f32.vlgmr.msra.gmra.mxu0 %vm357_vm0, %v1500_v6  ;;  %2467 = vmatpush3.msra.mxu1 %v3522_v22  ;;  %v2692_v5 = vpop.eup %2691  ;;  %2715 = vpow2.f32 %v893_v57  ;;  %v3581_v58 = vrot.slane %v3877_v2, %v3009_v0  ;;  %v909_v51 = vmul.f32 1.442695, %v3878_v38  ;;  %v1352_v50 = vmul.f32 %v3490_v27, %v3496_v15  ;;  %v3881_v42 = vld [vmem:[#allocation6_spill] sm:$0xff] }
 0x31a   : > { %2478 = vmatpush3.msra.mxu0 %v3524_v61  ;;  %v1173_v40 = vpop.permute.xlu0 %1172  ;;  %2468 = vmatprep.subr.mxu1 %v3876_v12  ;;  %v2694_v36 = vpop.eup %2693  ;;  %2717 = vpow2.f32 %v921_v35  ;;  %v1351_v17 = vmul.f32 %v3490_v27, %v3515_v11  ;;  %v937_v6 = vmul.f32 1.442695, %v3879_v19  ;;  %v1665_v39 = vmul.f32 %v2688_v63, %v3542_v18 }
 0x31b   : > { %v1364_v49 = vmul.f32 %v3494_v37, %v1173_v40  ;;  %2479 = vmatprep.subr.mxu0 %v3876_v12  ;;  %2469 = vmatpush3.msra.mxu1 %v3530_v47  ;;  %v2696_v44 = vpop.eup %2695  ;;  %v1667_v13 = vmul.f32 %v2694_v36, %v3522_v22  ;;  %2719 = vpow2.f32 %v911_v21 }
 0x31c   : > { %2480 = vmatpush3.msra.mxu0 %v3536_v4  ;;  %v1134_v54 = vpop.permute.xlu1 %1133  ;;  %2470 = vmatprep.subr.mxu1 %v3876_v12  ;;  %v2698_v48 = vpop.eup %2697  ;;  %v1666_v22 = vmul.f32 %v2696_v44, %v3530_v47  ;;  %2721 = vpow2.f32 %v899_v53  ;;  %v1673_v40 = vadd.f32 %v1665_v39, %v1352_v50 }
 0x31d   : > { %v3552_v7 = vadd.f32 %v1760_v33, %v1364_v49  ;;  %v1355_v30 = vmul.f32 %v3490_v27, %v1134_v54  ;;  %2481 = vmatprep.subr.mxu0 %v3876_v12  ;;  %2471 = vmatpush3.msra.mxu1 %v3542_v18  ;;  %2723 = vpow2.f32 %v939_v3 }
 0x31e   : > { %2482 = vmatpush3.msra.mxu0 %v1677_v24  ;;  %v1169_v9 = vpop.permute.xlu0 %1168  ;;  %2472 = vmatprep.subr.mxu1 %v3876_v12  ;;  %v2700_v24 = vpop.eup %2699  ;;  %2725 = vpow2.f32 %v909_v51 }
 0x31f   : > { %v1676_v28 = vadd.f32 %v1668_v60, %v1355_v30  ;;  %2473 = vmatpush3.msra.mxu1 %v3547_v32  ;;  %2483 = vmatprep.subr.mxu0 %v3876_v12  ;;  %v1851_v8 = vmul.f32 %v2690_v23, %v3552_v7  ;;  %v1363_v56 = vmul.f32 %v3494_v37, %v1169_v9  ;;  %v2702_v15 = vpop.eup %2701  ;;  %2727 = vpow2.f32 %v937_v6 }
 0x320   : > { %v1130_v43 = vpop.permute.xlu1 %1129  ;;  %2496 = vmatprep.subr.mxu1 %v3876_v12  ;;  %2493 = vmatprep.mubr.msk.f32.mxu0 %vm2772_vm5, %v3876_v12  ;;  %v2704_v62 = vpop.eup %2703  ;;  %v1664_v1 = vmul.f32 %v2700_v24, %v3547_v32  ;;  %v1762_v33 = vmul.f32 %v2702_v15, %v3524_v61  ;;  %v915_v32 = vmul.f32 1.442695, %v3881_v42 }
 0x321   : > { %v1759_v20 = vmul.f32 %v2692_v5, %v1676_v28  ;;  %v1354_v16 = vmul.f32 %v3490_v27, %v1130_v43  ;;  %2484 = vmatpush3.msra.mxu0 %v1676_v28  ;;  %v2706_v11 = vpop.eup %2705  ;;  %v3882_v28 = vld [vmem:[#allocation12_spill] sm:$0xff] }
 0x322   : > { %v1591_v45 = vpop.permute.xlu0 %1590  ;;  %2485 = vmatprep.subr.mxu0 %v3876_v12  ;;  %v2708_v18 = vpop.eup %2707  ;;  %v1672_v52 = vadd.f32 %v1664_v1, %v1351_v17  ;;  %v1761_v5 = vmul.f32 %v2706_v11, %v3536_v4  ;;  %v3886_v11 = vld [vmem:[#allocation16_spill] sm:$0xff] }
 0x323   : > { %v3573_v26 = vadd.f32 %v1759_v20, %v1363_v56  ;;  %v3575_v34 = vadd.f32 %v1667_v13, %v1354_v16  ;;  %2475 = vmatmul.mubr.msk.f32.vlgmr.msra.gmra.mxu1 %vm357_vm0, %v1591_v45  ;;  %v2710_v63 = vpop.eup %2709 }
 0x324   : > { %v1126_v31 = vpop.permute.xlu1 %1125  ;;  %2512 = vmatprep.mubr.msk.f32.mxu1 %vm2772_vm5, %v3876_v12  ;;  %v2712_v57 = vpop.eup %2711  ;;  %v1756_v16 = vmul.f32 %v2710_v63, %v1673_v40 }
 0x325   : > { %v1353_v41 = vmul.f32 %v3490_v27, %v1126_v31  ;;  %2486 = vmatpush3.msra.mxu0 %v3575_v34  ;;  %v3592_v59 = vmul.f32 %v2698_v48, %v3573_v26  ;;  %v927_v27 = vmul.f32 1.442695, %v3880_v25  ;;  %v2714_v35 = vpop.eup %2713  ;;  %v3883_v48 = vld [vmem:[#allocation7_spill] sm:$0xff] }
 0x326   : > { %v1208_v10 = vpop.permute.xlu0 %1207  ;;  %2487 = vmatprep.subr.mxu0 %v3876_v12  ;;  %v2716_v4 = vpop.eup %2715  ;;  %v951_v3 = vmul.f32 1.442695, %v3883_v48 }
 0x327   : > { %v1674_v46 = vadd.f32 %v1666_v22, %v1353_v41  ;;  %v1372_v47 = vmul.f32 %v3581_v58, %v1208_v10  ;;  %2729 = vpow2.f32 %v927_v27  ;;  %v2718_v45 = vpop.eup %2717  ;;  %v3884_v22 = vld [vmem:[#allocation5_spill] sm:$0xff]  ;;  %v1755_v6 = vmul.f32 %v2716_v4, %v1672_v52  ;;  %v3885_v27 = vld [vmem:[#allocation15_spill] sm:$0xff] }
 0x328   : > { %v1181_v55 = vpop.permute.xlu1 %1180  ;;  %2731 = vpow2.f32 %v915_v32  ;;  %v2720_v31 = vpop.eup %2719  ;;  %v933_v24 = vmul.f32 1.442695, %v3884_v22 }
 0x329   : > { %v3602_v29 = vadd.f32 %v1851_v8, %v1372_v47  ;;  %v1366_v49 = vmul.f32 %v3494_v37, %v1181_v55  ;;  %2488 = vmatpush3.msra.mxu0 %v1674_v46  ;;  %v1757_v23 = vmul.f32 %v2704_v62, %v1674_v46  ;;  %v925_v8 = vmul.f32 1.442695, %v3882_v28  ;;  %v2722_v17 = vpop.eup %2721 }
 0x32a   : > { %v1161_v54 = vpop.permute.xlu0 %1160  ;;  %2489 = vmatprep.subr.mxu0 %v3876_v12  ;;  %v2724_v39 = vpop.eup %2723  ;;  %v1758_v63 = vmul.f32 %v2722_v17, %v3575_v34 }
 0x32b   : > { %v1770_v30 = vadd.f32 %v1762_v33, %v1366_v49  ;;  %v1361_v60 = vmul.f32 %v3494_v37, %v1161_v54  ;;  %2490 = vmatpush3.msra.mxu0 %v1673_v40  ;;  %v3610_v9 = vmul.f32 %v2708_v18, %v3602_v29  ;;  %2733 = vpow2.f32 %v925_v8  ;;  %v2726_v47 = vpop.eup %2725 }
 0x32c   : > { %v1177_v61 = vpop.permute.xlu1 %1176  ;;  %2491 = vmatprep.subr.mxu0 %v3876_v12  ;;  %2735 = vpow2.f32 %v951_v3  ;;  %v949_v40 = vmul.f32 1.442695, %v3886_v11  ;;  %v2728_v49 = vpop.eup %2727  ;;  %v1004_v54 = vcombine.high %v3061_v14, %v3061_v14 }
 0x32d   : > { %v3615_v36 = vadd.f32 %v1757_v23, %v1361_v60  ;;  %v1365_v43 = vmul.f32 %v3494_v37, %v1177_v61  ;;  %2492 = vmatpush3.msra.mxu0 %v1672_v52  ;;  %2497 = vmatpush3.msra.mxu1 %v1770_v30  ;;  %v1853_v21 = vmul.f32 %v2712_v57, %v1770_v30  ;;  %2737 = vpow2.f32 %v933_v24  ;;  %v3887_v57 = vld [vmem:[#allocation8_spill] sm:$0xff] }
 0x32e   : > { %v1157_v44 = vpop.permute.xlu0 %1156  ;;  %2498 = vmatprep.subr.mxu1 %v3876_v12  ;;  %2515 = vmatprep.subr.mxu0 %v3876_v12  ;;  %v929_v61 = vmul.f32 1.442695, %v3887_v57 }
 0x32f   : > { %v1769_v56 = vadd.f32 %v1761_v5, %v1365_v43  ;;  %v1360_v20 = vmul.f32 %v3494_v37, %v1157_v44  ;;  %v3622_v13 = vmul.f32 %v2714_v35, %v3615_v36 }
 0x330   : > { %v1216_v53 = vpop.permute.xlu1 %1215 }
 0x331   : > { %v3625_v38 = vadd.f32 %v1756_v16, %v1360_v20  ;;  %v1374_v51 = vmul.f32 %v3581_v58, %v1216_v53  ;;  %2499 = vmatpush3.msra.mxu1 %v1769_v56  ;;  %v1852_v50 = vmul.f32 %v2718_v45, %v1769_v56  ;;  %v3888_v56 = vld [vmem:[#allocation11_spill] sm:$0xff] }
 0x332   : > { %v1153_v41 = vpop.permute.xlu0 %1152  ;;  %2500 = vmatprep.subr.mxu1 %v3876_v12  ;;  %v955_v20 = vmul.f32 1.442695, %v3888_v56 }
 0x333   : > { %v1861_v10 = vadd.f32 %v1853_v21, %v1374_v51  ;;  %v1359_v19 = vmul.f32 %v3494_v37, %v1153_v41  ;;  %2501 = vmatpush3.msra.mxu1 %v3552_v7  ;;  %v1847_v15 = vmul.f32 %v2720_v31, %v3625_v38  ;;  %v931_v7 = vmul.f32 1.442695, %v3885_v27  ;;  %v3890_v41 = vld [vmem:[#allocation13_spill] sm:$0xff] }
 0x334   : > { %v1212_v46 = vpop.permute.xlu1 %1211  ;;  %2502 = vmatprep.subr.mxu1 %v3876_v12  ;;  %v2730_v60 = vpop.eup %2729  ;;  %v953_v22 = vmul.f32 1.442695, %v3890_v41 }
 0x335   : > { %v1763_v62 = vadd.f32 %v1755_v6, %v1359_v19  ;;  %v1373_v1 = vmul.f32 %v3581_v58, %v1212_v46  ;;  %2503 = vmatpush3.msra.mxu1 %v3573_v26  ;;  %v3636_v55 = vmul.f32 %v2724_v39, %v1861_v10  ;;  %2739 = vpow2.f32 %v931_v7  ;;  %v2732_v5 = vpop.eup %2731 }
 0x336   : > { %v1192_v25 = vpop.permute.xlu0 %1191  ;;  %2504 = vmatprep.subr.mxu1 %v3876_v12  ;;  %2741 = vpow2.f32 %v949_v40 }
 0x337   : > { %v1860_v33 = vadd.f32 %v1852_v50, %v1373_v1  ;;  %v1368_v18 = vmul.f32 %v3581_v58, %v1192_v25  ;;  %v1846_v52 = vmul.f32 %v2726_v47, %v1763_v62  ;;  %2743 = vpow2.f32 %v929_v61  ;;  %v3892_v25 = vld [vmem:[#allocation19_spill] sm:$0xff] }
 0x338   : > { %v1165_v26 = vpop.permute.xlu1 %1164  ;;  %v2734_v21 = vpop.eup %2733  ;;  %2745 = vpow2.f32 %v955_v20  ;;  %v941_v27 = vmul.f32 1.442695, %v3892_v25 }
 0x339   : > { %v3644_v42 = vadd.f32 %v1847_v15, %v1368_v18  ;;  %v1362_v32 = vmul.f32 %v3494_v37, %v1165_v26  ;;  %v3648_v30 = vmul.f32 %v2728_v49, %v1860_v33  ;;  %v3656_v37 = vrot.slane %v1004_v54, %v3009_v0  ;;  %v2736_v31 = vpop.eup %2735 }
 0x33a   : > { %v1188_v23 = vpop.permute.xlu0 %1187  ;;  %v2738_v24 = vpop.eup %2737 }
 0x33b   : > { %v1766_v28 = vadd.f32 %v1758_v63, %v1362_v32  ;;  %v1367_v8 = vmul.f32 %v3581_v58, %v1188_v23  ;;  %v3653_v14 = vmul.f32 %v2730_v60, %v3644_v42 }
 0x33c   : > { %v1682_v35 = vpop.permute.xlu1 %1681 }
 0x33d   : > { %v3658_v34 = vadd.f32 %v1846_v52, %v1367_v8  ;;  %2494 = vmatmul.mubr.msk.f32.vlgmr.msra.gmra.mxu0 %vm357_vm0, %v1682_v35  ;;  %2505 = vmatpush3.msra.mxu1 %v1766_v28  ;;  %v1849_v43 = vmul.f32 %v2732_v5, %v1766_v28 }
 0x33e   : > { %2516 = vmatpush3.msra.mxu0 %v1861_v10  ;;  %v1243_v44 = vpop.permute.xlu0 %1242  ;;  %2506 = vmatprep.subr.mxu1 %v3876_v12 }
 0x33f   : > { %v1380_v4 = vmul.f32 %v3656_v37, %v1243_v44  ;;  %2517 = vmatprep.subr.mxu0 %v3876_v12  ;;  %2507 = vmatpush3.msra.mxu1 %v3615_v36  ;;  %v3667_v16 = vmul.f32 %v2734_v21, %v3658_v34  ;;  %v3889_v36 = vld [vmem:[#allocation18_spill] sm:$0xff] }
 0x340   : > { %2518 = vmatpush3.msra.mxu0 %v1860_v33  ;;  %v1204_v45 = vpop.permute.xlu1 %1203  ;;  %2508 = vmatprep.subr.mxu1 %v3876_v12  ;;  %v945_v3 = vmul.f32 1.442695, %v3889_v36 }
 0x341   : > { %v3671_v53 = vadd.f32 %v3610_v9, %v1380_v4  ;;  %v1371_v48 = vmul.f32 %v3581_v58, %v1204_v45  ;;  %2519 = vmatprep.subr.mxu0 %v3876_v12  ;;  %2509 = vmatpush3.msra.mxu1 %v3625_v38  ;;  %v1006_v38 = vcombine.high %v3877_v2, %v3877_v2 }
 0x342   : > { %2520 = vmatpush3.msra.mxu0 %v3602_v29  ;;  %v1239_v51 = vpop.permute.xlu0 %1238  ;;  %2510 = vmatprep.subr.mxu1 %v3876_v12  ;;  %v3891_v29 = vld [vmem:[#allocation14_spill] sm:$0xff]  ;;  %2747 = vpow2.f32 %v945_v3  ;;  %v2740_v39 = vpop.eup %2739 }
 0x343   : > { %v1858_v50 = vadd.f32 %v3592_v59, %v1371_v48  ;;  %2511 = vmatpush3.msra.mxu1 %v1763_v62  ;;  %2521 = vmatprep.subr.mxu0 %v3876_v12  ;;  %v2033_v9 = vmul.f32 %v2736_v31, %v3671_v53  ;;  %v943_v10 = vmul.f32 1.442695, %v3891_v29  ;;  %v1379_v59 = vmul.f32 %v3656_v37, %v1239_v51  ;;  %v2742_v47 = vpop.eup %2741 }
 0x344   : > { %v1200_v17 = vpop.permute.xlu1 %1199  ;;  %2534 = vmatprep.subr.mxu1 %v3876_v12  ;;  %2531 = vmatprep.mubr.msk.f32.mxu0 %vm2772_vm5, %v3876_v12  ;;  %2749 = vpow2.f32 %v953_v22  ;;  %v3696_v62 = vrot.slane %v1006_v38, %v3009_v0  ;;  %v2744_v18 = vpop.eup %2743 }
 0x345   : > { %v1941_v19 = vmul.f32 %v2738_v24, %v1858_v50  ;;  %v1370_v6 = vmul.f32 %v3581_v58, %v1200_v17  ;;  %2522 = vmatpush3.msra.mxu0 %v1858_v50  ;;  %2751 = vpow2.f32 %v943_v10  ;;  %v2746_v57 = vpop.eup %2745 }
 0x346   : > { %v1773_v15 = vpop.permute.xlu0 %1772  ;;  %2523 = vmatprep.subr.mxu0 %v3876_v12  ;;  %2753 = vpow2.f32 %v941_v27 }
 0x347   : > { %v3692_v2 = vadd.f32 %v1941_v19, %v1379_v59  ;;  %v1857_v46 = vadd.f32 %v1849_v43, %v1370_v6  ;;  %2513 = vmatmul.mubr.msk.f32.vlgmr.msra.gmra.mxu1 %vm357_vm0, %v1773_v15 }
 0x348   : > { %v1196_v1 = vpop.permute.xlu1 %1195  ;;  %2550 = vmatprep.mubr.msk.f32.mxu1 %vm2772_vm5, %v3876_v12 }
 0x349   : > { %v1369_v7 = vmul.f32 %v3581_v58, %v1196_v1  ;;  %2524 = vmatpush3.msra.mxu0 %v1857_v46  ;;  %v1940_v11 = vmul.f32 %v2740_v39, %v1857_v46  ;;  %v3703_v40 = vmul.f32 %v2742_v47, %v3692_v2 }
 0x34a   : > { %v1278_v49 = vpop.permute.xlu0 %1277  ;;  %2525 = vmatprep.subr.mxu0 %v3876_v12 }
 0x34b   : > { %v1856_v0 = vadd.f32 %v3622_v13, %v1369_v7  ;;  %v1388_v33 = vmul.f32 %v3696_v62, %v1278_v49  ;;  %v3893_v13 = vld [vmem:[#allocation17_spill] sm:$0xff] }
 0x34c   : > { %v1251_v52 = vpop.permute.xlu1 %1250  ;;  %v947_v23 = vmul.f32 1.442695, %v3893_v13  ;;  %v2182_v49 = vld [vmem:[%s3852_s9 + $0x78] sm:$0xff] }
 0x34d   : > { %v3708_v54 = vadd.f32 %v2033_v9, %v1388_v33  ;;  %v1382_v26 = vmul.f32 %v3656_v37, %v1251_v52  ;;  %2526 = vmatpush3.msra.mxu0 %v1856_v0  ;;  %v1939_v58 = vmul.f32 %v2744_v18, %v1856_v0  ;;  %v2180_v0 = vld [vmem:[%s3852_s9 + $0x68] sm:$0xff]  ;;  %v2179_v33 = vld [vmem:[%s3852_s9 + $0x60] sm:$0xff]  ;;  %v2178_v18 = vld [vmem:[%s3852_s9 + $0x58] sm:$0xff] }
 0x34e   : > { %v1231_v32 = vpop.permute.xlu0 %1230  ;;  %2527 = vmatprep.subr.mxu0 %v3876_v12  ;;  %2755 = vpow2.f32 %v947_v23  ;;  %v2177_v52 = vld [vmem:[%s3852_s9 + $0x50] sm:$0xff]  ;;  %v2170_v13 = vld [vmem:[%s3852_s9 + $0x18] sm:$0xff] }
 0x34f   : > { %v1952_v63 = vadd.f32 %v3636_v55, %v1382_v26  ;;  %v1377_v60 = vmul.f32 %v3656_v37, %v1231_v32  ;;  %2528 = vmatpush3.msra.mxu0 %v3644_v42  ;;  %v2748_v35 = vpop.eup %2747  ;;  %v2175_v26 = vld [vmem:[%s3852_s9 + $0x40] sm:$0xff]  ;;  %v2173_v32 = vld [vmem:[%s3852_s9 + $0x30] sm:$0xff] }
 0x350   : > { %v1247_v61 = vpop.permute.xlu1 %1246  ;;  %2529 = vmatprep.subr.mxu0 %v3876_v12  ;;  %v2169_v23 = vld [vmem:[%s3852_s9 + $0x10] sm:$0xff] }
 0x351   : > { %v1947_v5 = vadd.f32 %v1939_v58, %v1377_v60  ;;  %v1381_v28 = vmul.f32 %v3656_v37, %v1247_v61  ;;  %2530 = vmatpush3.msra.mxu0 %v3658_v34  ;;  %2535 = vmatpush3.msra.mxu1 %v1952_v63  ;;  %v2035_v8 = vmul.f32 %v2746_v57, %v1952_v63  ;;  %v2750_v44 = vpop.eup %2749  ;;  %v2174_v58 = vld [vmem:[%s3852_s9 + $0x38] sm:$0xff]  ;;  %v2172_v63 = vld [vmem:[%s3852_s9 + $0x28] sm:$0xff]  ;;  %v2171_v60 = vld [vmem:[%s3852_s9 + $0x20] sm:$0xff]  ;;  %v461_v57 = vpop.f32.mrf.mxu0 }
 0x352   : > { %v1227_v43 = vpop.permute.xlu0 %1226  ;;  %2536 = vmatprep.subr.mxu1 %v3876_v12  ;;  %2553 = vmatprep.subr.mxu0 %v3876_v12  ;;  %v2752_v45 = vpop.eup %2751  ;;  %v2168_v61 = vld [vmem:[%s3852_s9 + $0x8] sm:$0xff] }
 0x353   : > { %v1951_v55 = vadd.f32 %v3648_v30, %v1381_v28  ;;  %v1376_v42 = vmul.f32 %v3656_v37, %v1227_v43  ;;  %v3723_v21 = vmul.f32 %v2748_v35, %v1947_v5  ;;  %v2754_v50 = vpop.eup %2753  ;;  %v2167_v28 = vld [vmem:[%s3852_s9] sm:$0xff] }
 0x354   : > { %v1286_v4 = vpop.permute.xlu1 %1285 }
 0x355   : > { %v1946_v56 = vadd.f32 %v3653_v14, %v1376_v42  ;;  %v1390_v34 = vmul.f32 %v3696_v62, %v1286_v4  ;;  %2537 = vmatpush3.msra.mxu1 %v1951_v55  ;;  %v2034_v20 = vmul.f32 %v2750_v44, %v1951_v55 }
 0x356   : > { %v1223_v48 = vpop.permute.xlu0 %1222  ;;  %2538 = vmatprep.subr.mxu1 %v3876_v12 }
 0x357   : > { %v2043_v36 = vadd.f32 %v2035_v8, %v1390_v34  ;;  %v1375_v30 = vmul.f32 %v3656_v37, %v1223_v48  ;;  %2539 = vmatpush3.msra.mxu1 %v3671_v53  ;;  %v2029_v3 = vmul.f32 %v2752_v45, %v1946_v56 }
 0x358   : > { %v1282_v31 = vpop.permute.xlu1 %1281  ;;  %2540 = vmatprep.subr.mxu1 %v3876_v12 }
 0x359   : > { %v1945_v51 = vadd.f32 %v3667_v16, %v1375_v30  ;;  %v1389_v14 = vmul.f32 %v3696_v62, %v1282_v31  ;;  %2541 = vmatpush3.msra.mxu1 %v3692_v2 }
 0x35a   : > { %v1262_v9 = vpop.permute.xlu0 %1261  ;;  %2542 = vmatprep.subr.mxu1 %v3876_v12 }
 0x35b   : > { %v2042_v41 = vadd.f32 %v2034_v20, %v1389_v14  ;;  %v1384_v22 = vmul.f32 %v3696_v62, %v1262_v9  ;;  %v2028_v24 = vmul.f32 %v2754_v50, %v1945_v51  ;;  %v2756_v10 = vpop.eup %2755 }
 0x35c   : > { %v1235_v38 = vpop.permute.xlu1 %1234 }
 0x35d   : > { %v2037_v53 = vadd.f32 %v2029_v3, %v1384_v22  ;;  %v1378_v17 = vmul.f32 %v3656_v37, %v1235_v38  ;;  %v2327_v38 = vld [vmem:[%s3851_s8] ss:$0 sm:$0xff] }
 0x35e   : > { %v1955_v37 = vpop.permute.xlu0 %1954 }
 0x35f   : > { %v1948_v29 = vadd.f32 %v1940_v11, %v1378_v17 }
 0x360   : > { %v1864_v59 = vpop.permute.xlu1 %1863 }
 0x361   : > { %2532 = vmatmul.mubr.msk.f32.vlgmr.msra.gmra.mxu0 %vm357_vm0, %v1864_v59  ;;  %2543 = vmatpush3.msra.mxu1 %v1948_v29  ;;  %v2031_v16 = vmul.f32 %v2756_v10, %v1948_v29 }
 0x362   : > { %2554 = vmatpush3.msra.mxu0 %v2043_v36  ;;  %2544 = vmatprep.subr.mxu1 %v3876_v12  ;;  %v2328_v36 = vmul.f32 -1.442695, %v461_v57 }
 0x363   : > { %2555 = vmatprep.subr.mxu0 %v3876_v12  ;;  %2545 = vmatpush3.msra.mxu1 %v1947_v5 }
 0x364   : > { %2556 = vmatpush3.msra.mxu0 %v2042_v41  ;;  %v1274_v19 = vpop.permute.xlu1 %1273  ;;  %2546 = vmatprep.subr.mxu1 %v3876_v12  ;;  %2757 = vpow2.f32 %v2328_v36 }
 0x365   : > { %v1387_v6 = vmul.f32 %v3696_v62, %v1274_v19  ;;  %2557 = vmatprep.subr.mxu0 %v3876_v12  ;;  %2547 = vmatpush3.msra.mxu1 %v1946_v56  ;;  %v3894_v19 = vld [vmem:[#allocation2_spill] sm:$0xff] }
 0x366   : > { %2558 = vmatpush3.msra.mxu0 %v3708_v54  ;;  %2548 = vmatprep.subr.mxu1 %v3876_v12  ;;  %v2176_v54 = vld [vmem:[%s3852_s9 + $0x48] sm:$0xff] }
 0x367   : > { %v2040_v15 = vadd.f32 %v3703_v40, %v1387_v6  ;;  %2549 = vmatpush3.msra.mxu1 %v1945_v51  ;;  %2559 = vmatprep.subr.mxu0 %v3876_v12  ;;  %v2157_v6 = vmul.f32 %v2327_v38, %v3894_v19 }
 0x368   : > { %v1270_v39 = vpop.permute.xlu1 %1269  ;;  %2551 = vmatmul.mubr.msk.f32.vlgmr.msra.gmra.mxu1 %vm357_vm0, %v1955_v37  ;;  %2569 = vmatprep.mubr.msk.f32.mxu0 %vm2772_vm5, %v3876_v12 }
 0x369   : > { %v1386_v2 = vmul.f32 %v3696_v62, %v1270_v39  ;;  %2560 = vmatpush3.msra.mxu0 %v2040_v15  ;;  %2572 = vmatprep.subr.mxu1 %v3876_v12 }
 0x36a   : > { %2561 = vmatprep.subr.mxu0 %v3876_v12  ;;  %2604 = vmatprep.mubr.msk.f32.mxu1 %vm2772_vm5, %v3876_v12 }
 0x36b   : > { %v2039_v46 = vadd.f32 %v2031_v16, %v1386_v2  ;;  %2573 = vmatpush3.msra.mxu1 %v2182_v49 }
 0x36c   : > { %v1266_v47 = vpop.permute.xlu1 %1265  ;;  %2574 = vmatprep.subr.mxu1 %v3876_v12 }
 0x36d   : > { %v1385_v1 = vmul.f32 %v3696_v62, %v1266_v47  ;;  %2562 = vmatpush3.msra.mxu0 %v2039_v46 }
 0x36e   : > { %2563 = vmatprep.subr.mxu0 %v3876_v12 }
 0x36f   : > { %v2038_v25 = vadd.f32 %v3723_v21, %v1385_v1  ;;  %v2761_v1 = vld [vmem:[%s2845_s18] sm:$0xff] }
 0x370   : > { %v1258_v27 = vpop.permute.xlu1 %1257 }
 0x371   : > { %v1383_v7 = vmul.f32 %v3696_v62, %v1258_v27  ;;  %2564 = vmatpush3.msra.mxu0 %v2038_v25  ;;  %v2181_v62 = vld [vmem:[%s3852_s9 + $0x70] sm:$0xff]  ;;  %v2758_v3 = vpop.eup %2757 }
 0x372   : > { %2565 = vmatprep.subr.mxu0 %v3876_v12  ;;  %2575 = vmatpush3.msra.mxu1 %v2181_v62  ;;  %v2162_v31 = vadd.f32 1.0, %v2758_v3 }
 0x373   : > { %v2036_v11 = vadd.f32 %v2028_v24, %v1383_v7  ;;  %2566 = vmatpush3.msra.mxu0 %v2037_v53  ;;  %2576 = vmatprep.subr.mxu1 %v3876_v12 }
 0x374   : > { %v2046_v40 = vpop.permute.xlu1 %2045  ;;  %2567 = vmatprep.subr.mxu0 %v3876_v12  ;;  %2577 = vmatpush3.msra.mxu1 %v2180_v0  ;;  %2759 = vrcp.f32 %v2162_v31 }
 0x375   : > { %2568 = vmatpush3.msra.mxu0 %v2036_v11  ;;  %2578 = vmatprep.subr.mxu1 %v3876_v12 }
 0x376   : > { %2570 = vmatmul.mubr.msk.f32.vlgmr.msra.gmra.mxu0 %vm357_vm0, %v2046_v40  ;;  %2579 = vmatpush3.msra.mxu1 %v2179_v33 }
 0x377   : > { %2580 = vmatprep.subr.mxu1 %v3876_v12 }
 0x378   : > { %2581 = vmatpush3.msra.mxu1 %v2178_v18 }
 0x379   : > { %2582 = vmatprep.subr.mxu1 %v3876_v12 }
 0x37a   : > { %2583 = vmatpush3.msra.mxu1 %v2177_v52 }
 0x37b   : > { %2584 = vmatprep.subr.mxu1 %v3876_v12 }
 0x37c   : > { %2585 = vmatpush3.msra.mxu1 %v2176_v54 }
 0x37d   : > { %2586 = vmatprep.subr.mxu1 %v3876_v12 }
 0x37e   : > { %2587 = vmatpush3.msra.mxu1 %v2175_v26 }
 0x37f   : > { %2588 = vmatprep.subr.mxu1 %v3876_v12 }
 0x380   : > { %2589 = vmatpush3.msra.mxu1 %v2174_v58 }
 0x381   : > { %2590 = vmatprep.subr.mxu1 %v3876_v12  ;;  %v2760_v29 = vpop.eup %2759 }
 0x382   : > { %2591 = vmatpush3.msra.mxu1 %v2173_v32  ;;  %v2165_v39 = vmul.f32 %v2760_v29, %v461_v57 }
 0x383   : > { %2592 = vmatprep.subr.mxu1 %v3876_v12 }
 0x384   : > { %2593 = vmatpush3.msra.mxu1 %v2172_v63 }
 0x385   : > { %2594 = vmatprep.subr.mxu1 %v3876_v12 }
 0x386   : > { %2595 = vmatpush3.msra.mxu1 %v2171_v60 }
 0x387   : > { %2596 = vmatprep.subr.mxu1 %v3876_v12 }
 0x388   : > { %2597 = vmatpush3.msra.mxu1 %v2170_v13 }
 0x389   : > { %2598 = vmatprep.subr.mxu1 %v3876_v12 }
 0x38a   : > { %2599 = vmatpush3.msra.mxu1 %v2169_v23 }
 0x38b   : > { %2600 = vmatprep.subr.mxu1 %v3876_v12 }
 0x38c   : > { %2601 = vmatpush3.msra.mxu1 %v2168_v61 }
 0x38d   : > { %2602 = vmatprep.subr.mxu1 %v3876_v12 }
 0x38e   : > { %2603 = vmatpush3.msra.mxu1 %v2167_v28 }
 0x3be   : > { %v1478_v5 = vpop.f32.mrf.mxu0 }
 0x3c0   : > { %v2438_v8 = vpop.f32.mrf.mxu0 }
 0x3d9   : > { %v1569_v35 = vpop.f32.mrf.mxu0 }
 0x3da   : > { %v2120_v43 = vrot.slane %v1569_v35, 7 }
 0x3db   : > { %v2457_v55 = vpop.f32.mrf.mxu0 }
 0x3dc   : > { %v2141_v42 = vsel %vm2140_vm8, %v1478_v5, %v2120_v43 }
 0x3e3   : > { %v1660_v21 = vpop.f32.mrf.mxu1 }
 0x3e4   : > { %v2123_v44 = vrot.slane %v1660_v21, 6 }
 0x3e5   : > { %v2476_v4 = vpop.f32.mrf.mxu1 }
 0x3e6   : > { %v2143_v56 = vsel %vm2142_vm9, %v2141_v42, %v2123_v44 }
 0x3fd   : > { %v1751_v34 = vpop.f32.mrf.mxu0 }
 0x3fe   : > { %v2126_v50 = vrot.slane %v1751_v34, 5 }
 0x3ff   : > { %v2495_v20 = vpop.f32.mrf.mxu0 }
 0x400   : > { %v2144_v24 = vsel %vm468_vm1, %v2143_v56, %v2126_v50 }
 0x407   : > { %v1842_v45 = vpop.f32.mrf.mxu1 }
 0x408   : > { %v2129_v9 = vrot.slane %v1842_v45, 4 }
 0x409   : > { %v2514_v48 = vpop.f32.mrf.mxu1 }
 0x40a   : > { %v2146_v53 = vsel %vm2145_vm10, %v2144_v24, %v2129_v9 }
 0x421   : > { %v1933_v30 = vpop.f32.mrf.mxu0 }
 0x422   : > { %v2132_v41 = vrot.slane %v1933_v30, 3 }
 0x423   : > { %v2533_v12 = vpop.f32.mrf.mxu0 }
 0x424   : > { %v2147_v10 = vsel %vm520_vm4, %v2146_v53, %v2132_v41 }
 0x428   : > { %v2024_v51 = vpop.f32.mrf.mxu1 }
 0x429   : > { %v2135_v22 = vrot.slane %v2024_v51, 2 }
 0x42a   : > { %v2552_v14 = vpop.f32.mrf.mxu1 }
 0x42b   : > { %v2148_v16 = vsel %vm506_vm3, %v2147_v10, %v2135_v22 }
 0x436   : > { %v2115_v17 = vpop.f32.mrf.mxu0 }
 0x437   : > { %v2138_v59 = vrot.slane %v2115_v17, 1 }
 0x438   : > { %v2571_v37 = vpop.f32.mrf.mxu0 }
 0x439   : > { %v2149_v15 = vsel %vm492_vm2, %v2148_v16, %v2138_v59 }
 0x43a   : > { %v2158_v2 = vadd.f32 %v2157_v6, %v2149_v15 }
 0x43c   : > { %v2166_v46 = vmul.f32 %v2165_v39, %v2158_v2 }
 0x43e   : > { %2605 = vmatmul.mubr.f32.vlgmr.msra.gmra.mxu1 %v2166_v46 }
 0x4fe   : > { %v2249_v47 = vpop.f32.mrf.mxu1 }
 0x4ff   : > { %v2253_v25 = vadd.f32 %v2761_v1, %v2249_v47 }
 0x500   : > { %v2606_v27 = vpop.f32.mrf.mxu1 }
 0x501   : > { %2254 = vst.msk [vmem:[%s354_s12] sm:$0xff] %vm357_vm0, %v2253_v25 }
 0x502 PF: > { %s20_s13 = sadd.s32 1, %s2768_s13  }
 0x503   : > { %p17_p4 = scmp.ge.s32.totalorder %s20_s13, 4  }
 0x505   :  { %19 = sbr.rel (!%p17_p4) target bundleno = 1 (0x1), region = 90 }

</bundles_post_ra>
